<compile_context>
chip_gen: v7x
topology: tpu7x:2x2x1
jax: 0.10.0
libtpu: 0.0.40
codegen_flags: <defaults>
</compile_context>

<pallas_src>
import numpy as np

import jax
import jax.numpy as jnp
from jax.experimental import pallas as pl
from jax.experimental.pallas import tpu as pltpu


# ----------------------------- Pallas kernel ---------------------------------

def bigru_kernel(gi_ref, w_hh_ref, b_hh_ref, h0_ref, len_ref, out_ref, h_last_ref):
    """One GRU direction per grid step; time loop runs inside the kernel.

    gi_ref     : (T, 1, B, 3H)  precomputed input gates x_t @ W_ih^T + b_ih (this direction)
    w_hh_ref   : (1, H, 3H)     transposed hidden-to-hidden weights
    b_hh_ref   : (1, 1, 3H)
    h0_ref     : (1, B, H)
    len_ref    : (B, 1) int32   sequence lengths
    out_ref    : (T, 1, B, H)   per-step outputs (VMEM-resident, one HBM writeback)
    h_last_ref : (1, B, H)      final hidden
    """
    d = pl.program_id(0)                  # 0 = forward, 1 = backward
    T = gi_ref.shape[0]
    H = h0_ref.shape[-1]

    # Hoisted loop-invariants.
    w_hh = w_hh_ref[0]                    # (H, 3H)
    b_hh = b_hh_ref[0]                    # (1, 3H)
    lens = len_ref[...]                   # (B, 1) int32
    h_init = h0_ref[0].astype(jnp.float32)

    def step(s, h):
        # actual time index: forward walks 0..T-1, backward walks T-1..0
        t = jnp.where(d == 0, s, T - 1 - s)

        gi_t = gi_ref[t, 0].astype(jnp.float32)                       # (B, 3H)
        gh = jnp.dot(h, w_hh, preferred_element_type=jnp.float32) + b_hh

        # PyTorch GRU gate order: r, z, n
        r = jax.nn.sigmoid(gi_t[:, :H] + gh[:, :H])
        z = jax.nn.sigmoid(gi_t[:, H:2 * H] + gh[:, H:2 * H])
        n = jnp.tanh(gi_t[:, 2 * H:] + r * gh[:, 2 * H:])
        h_new = (1.0 - z) * n + z * h

        m = (t < lens).astype(jnp.float32)                            # (B, 1)
        h_upd = m * h_new + (1.0 - m) * h                             # freeze when padded
        out_ref[t, 0] = (m * h_new).astype(out_ref.dtype)             # padded positions -> 0
        return h_upd

    h_final = jax.lax.fori_loop(0, T, step, h_init, unroll=(T <= 16))
    h_last_ref[0] = h_final.astype(h_last_ref.dtype)


def _bigru(gi, w_hh_t, b_hh, h0, lens_i32):
    """gi: (T, n_dir, B, 3H); w_hh_t: (n_dir, H, 3H); b_hh: (n_dir, 1, 3H);
       h0: (n_dir, B, H); lens_i32: (B, 1) int32."""
    T, n_dir, B, threeH = gi.shape
    H = h0.shape[-1]

    out_tm, h_last = pl.pallas_call(
        bigru_kernel,
        out_shape=(
            jax.ShapeDtypeStruct((T, n_dir, B, H), jnp.float32),
            jax.ShapeDtypeStruct((n_dir, B, H), jnp.float32),
        ),
        grid=(n_dir,),
        in_specs=[
            pl.BlockSpec((T, 1, B, threeH), lambda d: (0, d, 0, 0)),   # gi (this dir)
            pl.BlockSpec((1, H, threeH), lambda d: (d, 0, 0)),         # W_hh^T
            pl.BlockSpec((1, 1, threeH), lambda d: (d, 0, 0)),         # b_hh
            pl.BlockSpec((1, B, H), lambda d: (d, 0, 0)),              # h0
            pl.BlockSpec((B, 1), lambda d: (0, 0)),                    # lengths
        ],
        out_specs=(
            pl.BlockSpec((T, 1, B, H), lambda d: (0, d, 0, 0)),        # outputs (full slab)
            pl.BlockSpec((1, B, H), lambda d: (d, 0, 0)),              # final hidden
        ),
        compiler_params=pltpu.CompilerParams(
            # the two directions are independent -> can run on both TensorCores (v7x)
            dimension_semantics=("parallel",),
        ),
    )(gi, w_hh_t, b_hh, h0, lens_i32)
    return out_tm, h_last


# ----------------------------- ContextEncoder --------------------------------

def init_context_encoder_params(key, input_size, hidden_size, bidirectional=True):
    """Deterministic parameter init mirroring nn.GRU shapes (+ orthogonal weight_hh)."""
    n_dir = 2 if bidirectional else 1
    k = 1.0 / jnp.sqrt(hidden_size)
    params = []
    for _ in range(n_dir):
        key, k1, k2, k3, k4 = jax.random.split(key, 5)
        w_ih = jax.random.uniform(k1, (3 * hidden_size, input_size), jnp.float32, -k, k)
        # weight_hh: orthogonal init (as in HREDEncoder._init_weights)
        a = jax.random.normal(k2, (3 * hidden_size, hidden_size), jnp.float32)
        q, r = jnp.linalg.qr(a)
        q = q * jnp.sign(jnp.diagonal(r))[None, :]
        w_hh = q
        b_ih = jax.random.uniform(k3, (3 * hidden_size,), jnp.float32, -k, k)
        b_hh = jax.random.uniform(k4, (3 * hidden_size,), jnp.float32, -k, k)
        params.append(dict(w_ih=w_ih, w_hh=w_hh, b_ih=b_ih, b_hh=b_hh))
    return params


def _static_max_length(lengths, T):
    """Trace-time max(lengths) when lengths is host data; no device->host sync."""
    if isinstance(lengths, (list, tuple)):
        return int(max(lengths))
    if isinstance(lengths, np.ndarray):
        return int(lengths.max())
    return T  # traced lengths: keep full T (padded steps are masked anyway)


def context_encoder_forward(params, x, lengths, h_0=None, rnn_type="gru"):
    """
    :param x: (bs, max_src_len, input_size) float32
    :param lengths: (bs,) int list / numpy / jax array
    :param h_0: optional (n_dir*n_layers, bs, hidden) initial hidden
    :return: out ~ (bs, max(lengths), n_dir*hidden), h_t ~ (n_dir*n_layers, bs, hidden)
    """
    if rnn_type != "gru":
        # TODO(synk): 'lstm' variant not implemented (module supports both; gru shown here)
        raise NotImplementedError(rnn_type)

    bs, T, D = x.shape
    H = params[0]["w_hh"].shape[-1]
    n_dir = len(params)

    if h_0 is None:
        h_0 = jnp.zeros((n_dir, bs, H), jnp.float32)

    # pad_packed_sequence pads only up to max(lengths): trim at trace time (also skips
    # fully-padded timesteps in the recurrence). No host sync.
    t_eff = min(_static_max_length(lengths, T), T)

    lens_i32 = jnp.asarray(lengths, jnp.int32).reshape(bs, 1)
    x_tm = jnp.transpose(x[:, :t_eff], (1, 0, 2)).astype(jnp.float32)       # (T, B, D)

    # ---- Hoisted input projection: one big GEMM for all timesteps & both directions ----
    w_ih_cat = jnp.concatenate(
        [jnp.transpose(params[d]["w_ih"]) for d in range(n_dir)], axis=1)   # (D, n_dir*3H)
    b_ih_cat = jnp.concatenate(
        [params[d]["b_ih"] for d in range(n_dir)], axis=0)                  # (n_dir*3H,)
    gi = jnp.dot(x_tm.reshape(t_eff * bs, D), w_ih_cat,
                 preferred_element_type=jnp.float32) + b_ih_cat             # (T*B, n_dir*3H)
    gi = gi.reshape(t_eff, bs, n_dir, 3 * H)
    gi = jnp.transpose(gi, (0, 2, 1, 3))                                    # (T, n_dir, B, 3H)

    # ---- Stacked recurrent weights, both directions in a single pallas_call ----
    w_hh_t = jnp.stack([jnp.transpose(params[d]["w_hh"]) for d in range(n_dir)], 0)  # (n_dir, H, 3H)
    b_hh = jnp.stack([params[d]["b_hh"][None, :] for d in range(n_dir)], 0)          # (n_dir, 1, 3H)

    out_tm, h_last = _bigru(gi, w_hh_t, b_hh, h_0.astype(jnp.float32), lens_i32)

    # (T, n_dir, B, H) -> (B, T, n_dir*H)   (fwd then bwd, as in PyTorch bi-GRU)
    out = jnp.transpose(out_tm, (2, 0, 1, 3)).reshape(bs, t_eff, n_dir * H)
    h_t = h_last                                                            # (n_dir, B, H)
    return out, h_t


# ----------------------------- Pure-JAX reference ----------------------------

def _gru_direction_ref(x_tm, mask_tm, w_ih_t, w_hh_t, b_ih, b_hh, h0, reverse):
    T, B, D = x_tm.shape
    H = h0.shape[-1]
    h = h0
    outs = [None] * T
    order = range(T - 1, -1, -1) if reverse else range(T)
    for t in order:
        gi = x_tm[t] @ w_ih_t + b_ih
        gh = h @ w_hh_t + b_hh
        r = jax.nn.sigmoid(gi[:, :H] + gh[:, :H])
        z = jax.nn.sigmoid(gi[:, H:2 * H] + gh[:, H:2 * H])
        n = jnp.tanh(gi[:, 2 * H:] + r * gh[:, 2 * H:])
        h_new = (1 - z) * n + z * h
        m = mask_tm[t]
        h = m * h_new + (1 - m) * h
        outs[t] = m * h_new
    return jnp.stack(outs, 0), h


# ----------------------------------- main -------------------------------------

if __name__ == "__main__":
    key = jax.random.PRNGKey(0)
    bs, seq, input_size, hidden = 2, 8, 32, 16

    k_param, k_x = jax.random.split(key)
    params = init_context_encoder_params(k_param, input_size, hidden, bidirectional=True)

    x = jax.random.normal(k_x, (bs, seq, input_size), jnp.float32)
    lengths = [8, 5]

    out, h_t = context_encoder_forward(params, x, lengths)
    out = jax.block_until_ready(out)
    h_t = jax.block_until_ready(h_t)

    # sanity check vs. pure-JAX masked bi-GRU reference
    lengths_a = jnp.asarray(lengths, jnp.int32)
    x_tm = jnp.transpose(x, (1, 0, 2))
    mask_tm = (jnp.arange(seq)[:, None] < lengths_a[None, :]).astype(jnp.float32)[:, :, None]
    h0 = jnp.zeros((2, bs, hidden), jnp.float32)
    refs = []
    for d in range(2):
        p = params[d]
        refs.append(_gru_direction_ref(
            x_tm, mask_tm, p["w_ih"].T, p["w_hh"].T,
            p["b_ih"][None, :], p["b_hh"][None, :], h0[d], reverse=(d == 1)))
    out_ref = jnp.transpose(jnp.concatenate([refs[0][0], refs[1][0]], -1), (1, 0, 2))
    h_ref = jnp.stack([refs[0][1], refs[1][1]], 0)

    t_out = max(lengths)
    assert out.shape == (bs, t_out, 2 * hidden), out.shape
    assert h_t.shape == (2, bs, hidden), h_t.shape
    assert jnp.allclose(out, out_ref[:, :t_out], atol=1e-4, rtol=1e-5), "output mismatch"
    assert jnp.allclose(h_t, h_ref, atol=1e-4, rtol=1e-5), "hidden mismatch"

    print("KERNEL_OK")
</pallas_src>

<mosaic_0001>
module attributes {stable_mosaic.version = 11 : i64} {
  func.func @bigru_kernel(%arg0: i32, %arg1: memref<8x1x2x48xf32, #tpu.memory_space<vmem>>, %arg2: memref<1x16x48xf32, #tpu.memory_space<vmem>>, %arg3: memref<1x1x48xf32, #tpu.memory_space<vmem>>, %arg4: memref<1x2x16xf32, #tpu.memory_space<vmem>>, %arg5: memref<2x1xi32, #tpu.memory_space<vmem>>, %arg6: memref<8x1x2x16xf32, #tpu.memory_space<vmem>>, %arg7: memref<1x2x16xf32, #tpu.memory_space<vmem>>) attributes {dimension_semantics = [#tpu.dimension_semantics<parallel>], iteration_bounds = array<i64: 2>, scalar_prefetch = 0 : i64, scratch_operands = 0 : i64, tpu.core_type = #tpu.core_type<tc>, window_params = [{transform_indices = @transform_0, window_bounds = array<i64: 8, 1, 2, 48>}, {transform_indices = @transform_1, window_bounds = array<i64: 1, 16, 48>}, {transform_indices = @transform_2, window_bounds = array<i64: 1, 1, 48>}, {transform_indices = @transform_3, window_bounds = array<i64: 1, 2, 16>}, {pipeline_mode = #tpu.pipeline_mode<synchronous>, transform_indices = @transform_4, window_bounds = array<i64: 2, 1>}, {transform_indices = @transform_5, window_bounds = array<i64: 8, 1, 2, 16>}, {transform_indices = @transform_6, window_bounds = array<i64: 1, 2, 16>}]} {
    %c0 = arith.constant 0 : index
    %c0_0 = arith.constant 0 : index
    %c0_1 = arith.constant 0 : index
    %0 = vector.load %arg2[%c0, %c0_0, %c0_1] : memref<1x16x48xf32, #tpu.memory_space<vmem>>, vector<1x16x48xf32>
    %1 = vector.shape_cast %0 : vector<1x16x48xf32> to vector<16x48xf32>
    %c0_2 = arith.constant 0 : index
    %c0_3 = arith.constant 0 : index
    %c0_4 = arith.constant 0 : index
    %2 = vector.load %arg3[%c0_2, %c0_3, %c0_4] : memref<1x1x48xf32, #tpu.memory_space<vmem>>, vector<1x1x48xf32>
    %3 = vector.shape_cast %2 : vector<1x1x48xf32> to vector<1x48xf32>
    %c0_5 = arith.constant 0 : index
    %c0_6 = arith.constant 0 : index
    %4 = vector.load %arg5[%c0_5, %c0_6] : memref<2x1xi32, #tpu.memory_space<vmem>>, vector<2x1xi32>
    %c0_7 = arith.constant 0 : index
    %c0_8 = arith.constant 0 : index
    %c0_9 = arith.constant 0 : index
    %5 = vector.load %arg4[%c0_7, %c0_8, %c0_9] : memref<1x2x16xf32, #tpu.memory_space<vmem>>, vector<1x2x16xf32>
    %6 = vector.shape_cast %5 : vector<1x2x16xf32> to vector<2x16xf32>
    %c0_i32 = arith.constant 0 : i32
    %c0_i32_10 = arith.constant 0 : i32
    %7 = arith.cmpi eq, %arg0, %c0_i32_10 : i32
    %c7_i32 = arith.constant 7 : i32
    %8 = arith.subi %c7_i32, %c0_i32 : i32
    %9 = arith.select %7, %c0_i32, %8 : i32
    %10 = arith.index_cast %9 : i32 to index
    %c0_11 = arith.constant 0 : index
    %c0_12 = arith.constant 0 : index
    %c0_13 = arith.constant 0 : index
    %11 = vector.load %arg1[%10, %c0_11, %c0_12, %c0_13] : memref<8x1x2x48xf32, #tpu.memory_space<vmem>>, vector<1x1x2x48xf32>
    %12 = vector.shape_cast %11 : vector<1x1x2x48xf32> to vector<2x48xf32>
    %cst = arith.constant dense<0.000000e+00> : vector<2x48xf32>
    %13 = tpu.matmul %6, %1, %cst {dimension_numbers = #tpu.dot_dimension_numbers<[1], [0], [0], [1], [0, 0, 1, 1], [], []>} : vector<2x16xf32>, vector<16x48xf32>, vector<2x48xf32> -> vector<2x48xf32>
    %14 = vector.broadcast %3 : vector<1x48xf32> to vector<2x48xf32>
    %15 = arith.addf %13, %14 : vector<2x48xf32>
    %16 = vector.extract_strided_slice %12 {offsets = [0, 0], sizes = [2, 16], strides = [1, 1]} : vector<2x48xf32> to vector<2x16xf32>
    %17 = vector.extract_strided_slice %15 {offsets = [0, 0], sizes = [2, 16], strides = [1, 1]} : vector<2x48xf32> to vector<2x16xf32>
    %18 = arith.addf %16, %17 : vector<2x16xf32>
    %19 = arith.negf %18 : vector<2x16xf32>
    %20 = math.exp %19 : vector<2x16xf32>
    %cst_14 = arith.constant 1.000000e+00 : f32
    %21 = vector.broadcast %cst_14 : f32 to vector<2x16xf32>
    %22 = arith.addf %21, %20 : vector<2x16xf32>
    %23 = arith.divf %21, %22 : vector<2x16xf32>
    %24 = vector.extract_strided_slice %12 {offsets = [0, 16], sizes = [2, 16], strides = [1, 1]} : vector<2x48xf32> to vector<2x16xf32>
    %25 = vector.extract_strided_slice %15 {offsets = [0, 16], sizes = [2, 16], strides = [1, 1]} : vector<2x48xf32> to vector<2x16xf32>
    %26 = arith.addf %24, %25 : vector<2x16xf32>
    %27 = arith.negf %26 : vector<2x16xf32>
    %28 = math.exp %27 : vector<2x16xf32>
    %cst_15 = arith.constant 1.000000e+00 : f32
    %29 = vector.broadcast %cst_15 : f32 to vector<2x16xf32>
    %30 = arith.addf %29, %28 : vector<2x16xf32>
    %31 = arith.divf %29, %30 : vector<2x16xf32>
    %32 = vector.extract_strided_slice %12 {offsets = [0, 32], sizes = [2, 16], strides = [1, 1]} : vector<2x48xf32> to vector<2x16xf32>
    %33 = vector.extract_strided_slice %15 {offsets = [0, 32], sizes = [2, 16], strides = [1, 1]} : vector<2x48xf32> to vector<2x16xf32>
    %34 = arith.mulf %23, %33 : vector<2x16xf32>
    %35 = arith.addf %32, %34 : vector<2x16xf32>
    %36 = math.tanh %35 : vector<2x16xf32>
    %cst_16 = arith.constant 1.000000e+00 : f32
    %37 = vector.broadcast %cst_16 : f32 to vector<2x16xf32>
    %38 = arith.subf %37, %31 : vector<2x16xf32>
    %39 = arith.mulf %38, %36 : vector<2x16xf32>
    %40 = arith.mulf %31, %6 : vector<2x16xf32>
    %41 = arith.addf %39, %40 : vector<2x16xf32>
    %42 = vector.broadcast %9 : i32 to vector<2x1xi32>
    %43 = arith.cmpi slt, %42, %4 : vector<2x1xi32>
    %44 = arith.extui %43 : vector<2x1xi1> to vector<2x1xi32>
    %45 = arith.sitofp %44 : vector<2x1xi32> to vector<2x1xf32>
    %46 = vector.broadcast %45 : vector<2x1xf32> to vector<2x16xf32>
    %47 = arith.mulf %46, %41 : vector<2x16xf32>
    %cst_17 = arith.constant 1.000000e+00 : f32
    %48 = vector.broadcast %cst_17 : f32 to vector<2x1xf32>
    %49 = arith.subf %48, %45 : vector<2x1xf32>
    %50 = vector.broadcast %49 : vector<2x1xf32> to vector<2x16xf32>
    %51 = arith.mulf %50, %6 : vector<2x16xf32>
    %52 = arith.addf %47, %51 : vector<2x16xf32>
    %53 = vector.broadcast %45 : vector<2x1xf32> to vector<2x16xf32>
    %54 = arith.mulf %53, %41 : vector<2x16xf32>
    %55 = arith.index_cast %9 : i32 to index
    %c0_18 = arith.constant 0 : index
    %c0_19 = arith.constant 0 : index
    %c0_20 = arith.constant 0 : index
    %56 = vector.load %arg6[%55, %c0_18, %c0_19, %c0_20] : memref<8x1x2x16xf32, #tpu.memory_space<vmem>>, vector<1x1x2x16xf32>
    %57 = vector.shape_cast %56 : vector<1x1x2x16xf32> to vector<2x16xf32>
    %58 = vector.shape_cast %54 : vector<2x16xf32> to vector<1x1x2x16xf32>
    tpu.vector_store %arg6[%55, %c0_18, %c0_19, %c0_20], %58 {strides = array<i32>} : memref<8x1x2x16xf32, #tpu.memory_space<vmem>>, vector<1x1x2x16xf32>,
    %c1_i32 = arith.constant 1 : i32
    %c0_i32_21 = arith.constant 0 : i32
    %59 = arith.cmpi eq, %arg0, %c0_i32_21 : i32
    %c7_i32_22 = arith.constant 7 : i32
    %60 = arith.subi %c7_i32_22, %c1_i32 : i32
    %61 = arith.select %59, %c1_i32, %60 : i32
    %62 = arith.index_cast %61 : i32 to index
    %c0_23 = arith.constant 0 : index
    %c0_24 = arith.constant 0 : index
    %c0_25 = arith.constant 0 : index
    %63 = vector.load %arg1[%62, %c0_23, %c0_24, %c0_25] : memref<8x1x2x48xf32, #tpu.memory_space<vmem>>, vector<1x1x2x48xf32>
    %64 = vector.shape_cast %63 : vector<1x1x2x48xf32> to vector<2x48xf32>
    %cst_26 = arith.constant dense<0.000000e+00> : vector<2x48xf32>
    %65 = tpu.matmul %52, %1, %cst_26 {dimension_numbers = #tpu.dot_dimension_numbers<[1], [0], [0], [1], [0, 0, 1, 1], [], []>} : vector<2x16xf32>, vector<16x48xf32>, vector<2x48xf32> -> vector<2x48xf32>
    %66 = vector.broadcast %3 : vector<1x48xf32> to vector<2x48xf32>
    %67 = arith.addf %65, %66 : vector<2x48xf32>
    %68 = vector.extract_strided_slice %64 {offsets = [0, 0], sizes = [2, 16], strides = [1, 1]} : vector<2x48xf32> to vector<2x16xf32>
    %69 = vector.extract_strided_slice %67 {offsets = [0, 0], sizes = [2, 16], strides = [1, 1]} : vector<2x48xf32> to vector<2x16xf32>
    %70 = arith.addf %68, %69 : vector<2x16xf32>
    %71 = arith.negf %70 : vector<2x16xf32>
    %72 = math.exp %71 : vector<2x16xf32>
    %cst_27 = arith.constant 1.000000e+00 : f32
    %73 = vector.broadcast %cst_27 : f32 to vector<2x16xf32>
    %74 = arith.addf %73, %72 : vector<2x16xf32>
    %75 = arith.divf %73, %74 : vector<2x16xf32>
    %76 = vector.extract_strided_slice %64 {offsets = [0, 16], sizes = [2, 16], strides = [1, 1]} : vector<2x48xf32> to vector<2x16xf32>
    %77 = vector.extract_strided_slice %67 {offsets = [0, 16], sizes = [2, 16], strides = [1, 1]} : vector<2x48xf32> to vector<2x16xf32>
    %78 = arith.addf %76, %77 : vector<2x16xf32>
    %79 = arith.negf %78 : vector<2x16xf32>
    %80 = math.exp %79 : vector<2x16xf32>
    %cst_28 = arith.constant 1.000000e+00 : f32
    %81 = vector.broadcast %cst_28 : f32 to vector<2x16xf32>
    %82 = arith.addf %81, %80 : vector<2x16xf32>
    %83 = arith.divf %81, %82 : vector<2x16xf32>
    %84 = vector.extract_strided_slice %64 {offsets = [0, 32], sizes = [2, 16], strides = [1, 1]} : vector<2x48xf32> to vector<2x16xf32>
    %85 = vector.extract_strided_slice %67 {offsets = [0, 32], sizes = [2, 16], strides = [1, 1]} : vector<2x48xf32> to vector<2x16xf32>
    %86 = arith.mulf %75, %85 : vector<2x16xf32>
    %87 = arith.addf %84, %86 : vector<2x16xf32>
    %88 = math.tanh %87 : vector<2x16xf32>
    %cst_29 = arith.constant 1.000000e+00 : f32
    %89 = vector.broadcast %cst_29 : f32 to vector<2x16xf32>
    %90 = arith.subf %89, %83 : vector<2x16xf32>
    %91 = arith.mulf %90, %88 : vector<2x16xf32>
    %92 = arith.mulf %83, %52 : vector<2x16xf32>
    %93 = arith.addf %91, %92 : vector<2x16xf32>
    %94 = vector.broadcast %61 : i32 to vector<2x1xi32>
    %95 = arith.cmpi slt, %94, %4 : vector<2x1xi32>
    %96 = arith.extui %95 : vector<2x1xi1> to vector<2x1xi32>
    %97 = arith.sitofp %96 : vector<2x1xi32> to vector<2x1xf32>
    %98 = vector.broadcast %97 : vector<2x1xf32> to vector<2x16xf32>
    %99 = arith.mulf %98, %93 : vector<2x16xf32>
    %cst_30 = arith.constant 1.000000e+00 : f32
    %100 = vector.broadcast %cst_30 : f32 to vector<2x1xf32>
    %101 = arith.subf %100, %97 : vector<2x1xf32>
    %102 = vector.broadcast %101 : vector<2x1xf32> to vector<2x16xf32>
    %103 = arith.mulf %102, %52 : vector<2x16xf32>
    %104 = arith.addf %99, %103 : vector<2x16xf32>
    %105 = vector.broadcast %97 : vector<2x1xf32> to vector<2x16xf32>
    %106 = arith.mulf %105, %93 : vector<2x16xf32>
    %107 = arith.index_cast %61 : i32 to index
    %c0_31 = arith.constant 0 : index
    %c0_32 = arith.constant 0 : index
    %c0_33 = arith.constant 0 : index
    %108 = vector.load %arg6[%107, %c0_31, %c0_32, %c0_33] : memref<8x1x2x16xf32, #tpu.memory_space<vmem>>, vector<1x1x2x16xf32>
    %109 = vector.shape_cast %108 : vector<1x1x2x16xf32> to vector<2x16xf32>
    %110 = vector.shape_cast %106 : vector<2x16xf32> to vector<1x1x2x16xf32>
    tpu.vector_store %arg6[%107, %c0_31, %c0_32, %c0_33], %110 {strides = array<i32>} : memref<8x1x2x16xf32, #tpu.memory_space<vmem>>, vector<1x1x2x16xf32>,
    %c2_i32 = arith.constant 2 : i32
    %c0_i32_34 = arith.constant 0 : i32
    %111 = arith.cmpi eq, %arg0, %c0_i32_34 : i32
    %c7_i32_35 = arith.constant 7 : i32
    %112 = arith.subi %c7_i32_35, %c2_i32 : i32
    %113 = arith.select %111, %c2_i32, %112 : i32
    %114 = arith.index_cast %113 : i32 to index
    %c0_36 = arith.constant 0 : index
    %c0_37 = arith.constant 0 : index
    %c0_38 = arith.constant 0 : index
    %115 = vector.load %arg1[%114, %c0_36, %c0_37, %c0_38] : memref<8x1x2x48xf32, #tpu.memory_space<vmem>>, vector<1x1x2x48xf32>
    %116 = vector.shape_cast %115 : vector<1x1x2x48xf32> to vector<2x48xf32>
    %cst_39 = arith.constant dense<0.000000e+00> : vector<2x48xf32>
    %117 = tpu.matmul %104, %1, %cst_39 {dimension_numbers = #tpu.dot_dimension_numbers<[1], [0], [0], [1], [0, 0, 1, 1], [], []>} : vector<2x16xf32>, vector<16x48xf32>, vector<2x48xf32> -> vector<2x48xf32>
    %118 = vector.broadcast %3 : vector<1x48xf32> to vector<2x48xf32>
    %119 = arith.addf %117, %118 : vector<2x48xf32>
    %120 = vector.extract_strided_slice %116 {offsets = [0, 0], sizes = [2, 16], strides = [1, 1]} : vector<2x48xf32> to vector<2x16xf32>
    %121 = vector.extract_strided_slice %119 {offsets = [0, 0], sizes = [2, 16], strides = [1, 1]} : vector<2x48xf32> to vector<2x16xf32>
    %122 = arith.addf %120, %121 : vector<2x16xf32>
    %123 = arith.negf %122 : vector<2x16xf32>
    %124 = math.exp %123 : vector<2x16xf32>
    %cst_40 = arith.constant 1.000000e+00 : f32
    %125 = vector.broadcast %cst_40 : f32 to vector<2x16xf32>
    %126 = arith.addf %125, %124 : vector<2x16xf32>
    %127 = arith.divf %125, %126 : vector<2x16xf32>
    %128 = vector.extract_strided_slice %116 {offsets = [0, 16], sizes = [2, 16], strides = [1, 1]} : vector<2x48xf32> to vector<2x16xf32>
    %129 = vector.extract_strided_slice %119 {offsets = [0, 16], sizes = [2, 16], strides = [1, 1]} : vector<2x48xf32> to vector<2x16xf32>
    %130 = arith.addf %128, %129 : vector<2x16xf32>
    %131 = arith.negf %130 : vector<2x16xf32>
    %132 = math.exp %131 : vector<2x16xf32>
    %cst_41 = arith.constant 1.000000e+00 : f32
    %133 = vector.broadcast %cst_41 : f32 to vector<2x16xf32>
    %134 = arith.addf %133, %132 : vector<2x16xf32>
    %135 = arith.divf %133, %134 : vector<2x16xf32>
    %136 = vector.extract_strided_slice %116 {offsets = [0, 32], sizes = [2, 16], strides = [1, 1]} : vector<2x48xf32> to vector<2x16xf32>
    %137 = vector.extract_strided_slice %119 {offsets = [0, 32], sizes = [2, 16], strides = [1, 1]} : vector<2x48xf32> to vector<2x16xf32>
    %138 = arith.mulf %127, %137 : vector<2x16xf32>
    %139 = arith.addf %136, %138 : vector<2x16xf32>
    %140 = math.tanh %139 : vector<2x16xf32>
    %cst_42 = arith.constant 1.000000e+00 : f32
    %141 = vector.broadcast %cst_42 : f32 to vector<2x16xf32>
    %142 = arith.subf %141, %135 : vector<2x16xf32>
    %143 = arith.mulf %142, %140 : vector<2x16xf32>
    %144 = arith.mulf %135, %104 : vector<2x16xf32>
    %145 = arith.addf %143, %144 : vector<2x16xf32>
    %146 = vector.broadcast %113 : i32 to vector<2x1xi32>
    %147 = arith.cmpi slt, %146, %4 : vector<2x1xi32>
    %148 = arith.extui %147 : vector<2x1xi1> to vector<2x1xi32>
    %149 = arith.sitofp %148 : vector<2x1xi32> to vector<2x1xf32>
    %150 = vector.broadcast %149 : vector<2x1xf32> to vector<2x16xf32>
    %151 = arith.mulf %150, %145 : vector<2x16xf32>
    %cst_43 = arith.constant 1.000000e+00 : f32
    %152 = vector.broadcast %cst_43 : f32 to vector<2x1xf32>
    %153 = arith.subf %152, %149 : vector<2x1xf32>
    %154 = vector.broadcast %153 : vector<2x1xf32> to vector<2x16xf32>
    %155 = arith.mulf %154, %104 : vector<2x16xf32>
    %156 = arith.addf %151, %155 : vector<2x16xf32>
    %157 = vector.broadcast %149 : vector<2x1xf32> to vector<2x16xf32>
    %158 = arith.mulf %157, %145 : vector<2x16xf32>
    %159 = arith.index_cast %113 : i32 to index
    %c0_44 = arith.constant 0 : index
    %c0_45 = arith.constant 0 : index
    %c0_46 = arith.constant 0 : index
    %160 = vector.load %arg6[%159, %c0_44, %c0_45, %c0_46] : memref<8x1x2x16xf32, #tpu.memory_space<vmem>>, vector<1x1x2x16xf32>
    %161 = vector.shape_cast %160 : vector<1x1x2x16xf32> to vector<2x16xf32>
    %162 = vector.shape_cast %158 : vector<2x16xf32> to vector<1x1x2x16xf32>
    tpu.vector_store %arg6[%159, %c0_44, %c0_45, %c0_46], %162 {strides = array<i32>} : memref<8x1x2x16xf32, #tpu.memory_space<vmem>>, vector<1x1x2x16xf32>,
    %c3_i32 = arith.constant 3 : i32
    %c0_i32_47 = arith.constant 0 : i32
    %163 = arith.cmpi eq, %arg0, %c0_i32_47 : i32
    %c7_i32_48 = arith.constant 7 : i32
    %164 = arith.subi %c7_i32_48, %c3_i32 : i32
    %165 = arith.select %163, %c3_i32, %164 : i32
    %166 = arith.index_cast %165 : i32 to index
    %c0_49 = arith.constant 0 : index
    %c0_50 = arith.constant 0 : index
    %c0_51 = arith.constant 0 : index
    %167 = vector.load %arg1[%166, %c0_49, %c0_50, %c0_51] : memref<8x1x2x48xf32, #tpu.memory_space<vmem>>, vector<1x1x2x48xf32>
    %168 = vector.shape_cast %167 : vector<1x1x2x48xf32> to vector<2x48xf32>
    %cst_52 = arith.constant dense<0.000000e+00> : vector<2x48xf32>
    %169 = tpu.matmul %156, %1, %cst_52 {dimension_numbers = #tpu.dot_dimension_numbers<[1], [0], [0], [1], [0, 0, 1, 1], [], []>} : vector<2x16xf32>, vector<16x48xf32>, vector<2x48xf32> -> vector<2x48xf32>
    %170 = vector.broadcast %3 : vector<1x48xf32> to vector<2x48xf32>
    %171 = arith.addf %169, %170 : vector<2x48xf32>
    %172 = vector.extract_strided_slice %168 {offsets = [0, 0], sizes = [2, 16], strides = [1, 1]} : vector<2x48xf32> to vector<2x16xf32>
    %173 = vector.extract_strided_slice %171 {offsets = [0, 0], sizes = [2, 16], strides = [1, 1]} : vector<2x48xf32> to vector<2x16xf32>
    %174 = arith.addf %172, %173 : vector<2x16xf32>
    %175 = arith.negf %174 : vector<2x16xf32>
    %176 = math.exp %175 : vector<2x16xf32>
    %cst_53 = arith.constant 1.000000e+00 : f32
    %177 = vector.broadcast %cst_53 : f32 to vector<2x16xf32>
    %178 = arith.addf %177, %176 : vector<2x16xf32>
    %179 = arith.divf %177, %178 : vector<2x16xf32>
    %180 = vector.extract_strided_slice %168 {offsets = [0, 16], sizes = [2, 16], strides = [1, 1]} : vector<2x48xf32> to vector<2x16xf32>
    %181 = vector.extract_strided_slice %171 {offsets = [0, 16], sizes = [2, 16], strides = [1, 1]} : vector<2x48xf32> to vector<2x16xf32>
    %182 = arith.addf %180, %181 : vector<2x16xf32>
    %183 = arith.negf %182 : vector<2x16xf32>
    %184 = math.exp %183 : vector<2x16xf32>
    %cst_54 = arith.constant 1.000000e+00 : f32
    %185 = vector.broadcast %cst_54 : f32 to vector<2x16xf32>
    %186 = arith.addf %185, %184 : vector<2x16xf32>
    %187 = arith.divf %185, %186 : vector<2x16xf32>
    %188 = vector.extract_strided_slice %168 {offsets = [0, 32], sizes = [2, 16], strides = [1, 1]} : vector<2x48xf32> to vector<2x16xf32>
    %189 = vector.extract_strided_slice %171 {offsets = [0, 32], sizes = [2, 16], strides = [1, 1]} : vector<2x48xf32> to vector<2x16xf32>
    %190 = arith.mulf %179, %189 : vector<2x16xf32>
    %191 = arith.addf %188, %190 : vector<2x16xf32>
    %192 = math.tanh %191 : vector<2x16xf32>
    %cst_55 = arith.constant 1.000000e+00 : f32
    %193 = vector.broadcast %cst_55 : f32 to vector<2x16xf32>
    %194 = arith.subf %193, %187 : vector<2x16xf32>
    %195 = arith.mulf %194, %192 : vector<2x16xf32>
    %196 = arith.mulf %187, %156 : vector<2x16xf32>
    %197 = arith.addf %195, %196 : vector<2x16xf32>
    %198 = vector.broadcast %165 : i32 to vector<2x1xi32>
    %199 = arith.cmpi slt, %198, %4 : vector<2x1xi32>
    %200 = arith.extui %199 : vector<2x1xi1> to vector<2x1xi32>
    %201 = arith.sitofp %200 : vector<2x1xi32> to vector<2x1xf32>
    %202 = vector.broadcast %201 : vector<2x1xf32> to vector<2x16xf32>
    %203 = arith.mulf %202, %197 : vector<2x16xf32>
    %cst_56 = arith.constant 1.000000e+00 : f32
    %204 = vector.broadcast %cst_56 : f32 to vector<2x1xf32>
    %205 = arith.subf %204, %201 : vector<2x1xf32>
    %206 = vector.broadcast %205 : vector<2x1xf32> to vector<2x16xf32>
    %207 = arith.mulf %206, %156 : vector<2x16xf32>
    %208 = arith.addf %203, %207 : vector<2x16xf32>
    %209 = vector.broadcast %201 : vector<2x1xf32> to vector<2x16xf32>
    %210 = arith.mulf %209, %197 : vector<2x16xf32>
    %211 = arith.index_cast %165 : i32 to index
    %c0_57 = arith.constant 0 : index
    %c0_58 = arith.constant 0 : index
    %c0_59 = arith.constant 0 : index
    %212 = vector.load %arg6[%211, %c0_57, %c0_58, %c0_59] : memref<8x1x2x16xf32, #tpu.memory_space<vmem>>, vector<1x1x2x16xf32>
    %213 = vector.shape_cast %212 : vector<1x1x2x16xf32> to vector<2x16xf32>
    %214 = vector.shape_cast %210 : vector<2x16xf32> to vector<1x1x2x16xf32>
    tpu.vector_store %arg6[%211, %c0_57, %c0_58, %c0_59], %214 {strides = array<i32>} : memref<8x1x2x16xf32, #tpu.memory_space<vmem>>, vector<1x1x2x16xf32>,
    %c4_i32 = arith.constant 4 : i32
    %c0_i32_60 = arith.constant 0 : i32
    %215 = arith.cmpi eq, %arg0, %c0_i32_60 : i32
    %c7_i32_61 = arith.constant 7 : i32
    %216 = arith.subi %c7_i32_61, %c4_i32 : i32
    %217 = arith.select %215, %c4_i32, %216 : i32
    %218 = arith.index_cast %217 : i32 to index
    %c0_62 = arith.constant 0 : index
    %c0_63 = arith.constant 0 : index
    %c0_64 = arith.constant 0 : index
    %219 = vector.load %arg1[%218, %c0_62, %c0_63, %c0_64] : memref<8x1x2x48xf32, #tpu.memory_space<vmem>>, vector<1x1x2x48xf32>
    %220 = vector.shape_cast %219 : vector<1x1x2x48xf32> to vector<2x48xf32>
    %cst_65 = arith.constant dense<0.000000e+00> : vector<2x48xf32>
    %221 = tpu.matmul %208, %1, %cst_65 {dimension_numbers = #tpu.dot_dimension_numbers<[1], [0], [0], [1], [0, 0, 1, 1], [], []>} : vector<2x16xf32>, vector<16x48xf32>, vector<2x48xf32> -> vector<2x48xf32>
    %222 = vector.broadcast %3 : vector<1x48xf32> to vector<2x48xf32>
    %223 = arith.addf %221, %222 : vector<2x48xf32>
    %224 = vector.extract_strided_slice %220 {offsets = [0, 0], sizes = [2, 16], strides = [1, 1]} : vector<2x48xf32> to vector<2x16xf32>
    %225 = vector.extract_strided_slice %223 {offsets = [0, 0], sizes = [2, 16], strides = [1, 1]} : vector<2x48xf32> to vector<2x16xf32>
    %226 = arith.addf %224, %225 : vector<2x16xf32>
    %227 = arith.negf %226 : vector<2x16xf32>
    %228 = math.exp %227 : vector<2x16xf32>
    %cst_66 = arith.constant 1.000000e+00 : f32
    %229 = vector.broadcast %cst_66 : f32 to vector<2x16xf32>
    %230 = arith.addf %229, %228 : vector<2x16xf32>
    %231 = arith.divf %229, %230 : vector<2x16xf32>
    %232 = vector.extract_strided_slice %220 {offsets = [0, 16], sizes = [2, 16], strides = [1, 1]} : vector<2x48xf32> to vector<2x16xf32>
    %233 = vector.extract_strided_slice %223 {offsets = [0, 16], sizes = [2, 16], strides = [1, 1]} : vector<2x48xf32> to vector<2x16xf32>
    %234 = arith.addf %232, %233 : vector<2x16xf32>
    %235 = arith.negf %234 : vector<2x16xf32>
    %236 = math.exp %235 : vector<2x16xf32>
    %cst_67 = arith.constant 1.000000e+00 : f32
    %237 = vector.broadcast %cst_67 : f32 to vector<2x16xf32>
    %238 = arith.addf %237, %236 : vector<2x16xf32>
    %239 = arith.divf %237, %238 : vector<2x16xf32>
    %240 = vector.extract_strided_slice %220 {offsets = [0, 32], sizes = [2, 16], strides = [1, 1]} : vector<2x48xf32> to vector<2x16xf32>
    %241 = vector.extract_strided_slice %223 {offsets = [0, 32], sizes = [2, 16], strides = [1, 1]} : vector<2x48xf32> to vector<2x16xf32>
    %242 = arith.mulf %231, %241 : vector<2x16xf32>
    %243 = arith.addf %240, %242 : vector<2x16xf32>
    %244 = math.tanh %243 : vector<2x16xf32>
    %cst_68 = arith.constant 1.000000e+00 : f32
    %245 = vector.broadcast %cst_68 : f32 to vector<2x16xf32>
    %246 = arith.subf %245, %239 : vector<2x16xf32>
    %247 = arith.mulf %246, %244 : vector<2x16xf32>
    %248 = arith.mulf %239, %208 : vector<2x16xf32>
    %249 = arith.addf %247, %248 : vector<2x16xf32>
    %250 = vector.broadcast %217 : i32 to vector<2x1xi32>
    %251 = arith.cmpi slt, %250, %4 : vector<2x1xi32>
    %252 = arith.extui %251 : vector<2x1xi1> to vector<2x1xi32>
    %253 = arith.sitofp %252 : vector<2x1xi32> to vector<2x1xf32>
    %254 = vector.broadcast %253 : vector<2x1xf32> to vector<2x16xf32>
    %255 = arith.mulf %254, %249 : vector<2x16xf32>
    %cst_69 = arith.constant 1.000000e+00 : f32
    %256 = vector.broadcast %cst_69 : f32 to vector<2x1xf32>
    %257 = arith.subf %256, %253 : vector<2x1xf32>
    %258 = vector.broadcast %257 : vector<2x1xf32> to vector<2x16xf32>
    %259 = arith.mulf %258, %208 : vector<2x16xf32>
    %260 = arith.addf %255, %259 : vector<2x16xf32>
    %261 = vector.broadcast %253 : vector<2x1xf32> to vector<2x16xf32>
    %262 = arith.mulf %261, %249 : vector<2x16xf32>
    %263 = arith.index_cast %217 : i32 to index
    %c0_70 = arith.constant 0 : index
    %c0_71 = arith.constant 0 : index
    %c0_72 = arith.constant 0 : index
    %264 = vector.load %arg6[%263, %c0_70, %c0_71, %c0_72] : memref<8x1x2x16xf32, #tpu.memory_space<vmem>>, vector<1x1x2x16xf32>
    %265 = vector.shape_cast %264 : vector<1x1x2x16xf32> to vector<2x16xf32>
    %266 = vector.shape_cast %262 : vector<2x16xf32> to vector<1x1x2x16xf32>
    tpu.vector_store %arg6[%263, %c0_70, %c0_71, %c0_72], %266 {strides = array<i32>} : memref<8x1x2x16xf32, #tpu.memory_space<vmem>>, vector<1x1x2x16xf32>,
    %c5_i32 = arith.constant 5 : i32
    %c0_i32_73 = arith.constant 0 : i32
    %267 = arith.cmpi eq, %arg0, %c0_i32_73 : i32
    %c7_i32_74 = arith.constant 7 : i32
    %268 = arith.subi %c7_i32_74, %c5_i32 : i32
    %269 = arith.select %267, %c5_i32, %268 : i32
    %270 = arith.index_cast %269 : i32 to index
    %c0_75 = arith.constant 0 : index
    %c0_76 = arith.constant 0 : index
    %c0_77 = arith.constant 0 : index
    %271 = vector.load %arg1[%270, %c0_75, %c0_76, %c0_77] : memref<8x1x2x48xf32, #tpu.memory_space<vmem>>, vector<1x1x2x48xf32>
    %272 = vector.shape_cast %271 : vector<1x1x2x48xf32> to vector<2x48xf32>
    %cst_78 = arith.constant dense<0.000000e+00> : vector<2x48xf32>
    %273 = tpu.matmul %260, %1, %cst_78 {dimension_numbers = #tpu.dot_dimension_numbers<[1], [0], [0], [1], [0, 0, 1, 1], [], []>} : vector<2x16xf32>, vector<16x48xf32>, vector<2x48xf32> -> vector<2x48xf32>
    %274 = vector.broadcast %3 : vector<1x48xf32> to vector<2x48xf32>
    %275 = arith.addf %273, %274 : vector<2x48xf32>
    %276 = vector.extract_strided_slice %272 {offsets = [0, 0], sizes = [2, 16], strides = [1, 1]} : vector<2x48xf32> to vector<2x16xf32>
    %277 = vector.extract_strided_slice %275 {offsets = [0, 0], sizes = [2, 16], strides = [1, 1]} : vector<2x48xf32> to vector<2x16xf32>
    %278 = arith.addf %276, %277 : vector<2x16xf32>
    %279 = arith.negf %278 : vector<2x16xf32>
    %280 = math.exp %279 : vector<2x16xf32>
    %cst_79 = arith.constant 1.000000e+00 : f32
    %281 = vector.broadcast %cst_79 : f32 to vector<2x16xf32>
    %282 = arith.addf %281, %280 : vector<2x16xf32>
    %283 = arith.divf %281, %282 : vector<2x16xf32>
    %284 = vector.extract_strided_slice %272 {offsets = [0, 16], sizes = [2, 16], strides = [1, 1]} : vector<2x48xf32> to vector<2x16xf32>
    %285 = vector.extract_strided_slice %275 {offsets = [0, 16], sizes = [2, 16], strides = [1, 1]} : vector<2x48xf32> to vector<2x16xf32>
    %286 = arith.addf %284, %285 : vector<2x16xf32>
    %287 = arith.negf %286 : vector<2x16xf32>
    %288 = math.exp %287 : vector<2x16xf32>
    %cst_80 = arith.constant 1.000000e+00 : f32
    %289 = vector.broadcast %cst_80 : f32 to vector<2x16xf32>
    %290 = arith.addf %289, %288 : vector<2x16xf32>
    %291 = arith.divf %289, %290 : vector<2x16xf32>
    %292 = vector.extract_strided_slice %272 {offsets = [0, 32], sizes = [2, 16], strides = [1, 1]} : vector<2x48xf32> to vector<2x16xf32>
    %293 = vector.extract_strided_slice %275 {offsets = [0, 32], sizes = [2, 16], strides = [1, 1]} : vector<2x48xf32> to vector<2x16xf32>
    %294 = arith.mulf %283, %293 : vector<2x16xf32>
    %295 = arith.addf %292, %294 : vector<2x16xf32>
    %296 = math.tanh %295 : vector<2x16xf32>
    %cst_81 = arith.constant 1.000000e+00 : f32
    %297 = vector.broadcast %cst_81 : f32 to vector<2x16xf32>
    %298 = arith.subf %297, %291 : vector<2x16xf32>
    %299 = arith.mulf %298, %296 : vector<2x16xf32>
    %300 = arith.mulf %291, %260 : vector<2x16xf32>
    %301 = arith.addf %299, %300 : vector<2x16xf32>
    %302 = vector.broadcast %269 : i32 to vector<2x1xi32>
    %303 = arith.cmpi slt, %302, %4 : vector<2x1xi32>
    %304 = arith.extui %303 : vector<2x1xi1> to vector<2x1xi32>
    %305 = arith.sitofp %304 : vector<2x1xi32> to vector<2x1xf32>
    %306 = vector.broadcast %305 : vector<2x1xf32> to vector<2x16xf32>
    %307 = arith.mulf %306, %301 : vector<2x16xf32>
    %cst_82 = arith.constant 1.000000e+00 : f32
    %308 = vector.broadcast %cst_82 : f32 to vector<2x1xf32>
    %309 = arith.subf %308, %305 : vector<2x1xf32>
    %310 = vector.broadcast %309 : vector<2x1xf32> to vector<2x16xf32>
    %311 = arith.mulf %310, %260 : vector<2x16xf32>
    %312 = arith.addf %307, %311 : vector<2x16xf32>
    %313 = vector.broadcast %305 : vector<2x1xf32> to vector<2x16xf32>
    %314 = arith.mulf %313, %301 : vector<2x16xf32>
    %315 = arith.index_cast %269 : i32 to index
    %c0_83 = arith.constant 0 : index
    %c0_84 = arith.constant 0 : index
    %c0_85 = arith.constant 0 : index
    %316 = vector.load %arg6[%315, %c0_83, %c0_84, %c0_85] : memref<8x1x2x16xf32, #tpu.memory_space<vmem>>, vector<1x1x2x16xf32>
    %317 = vector.shape_cast %316 : vector<1x1x2x16xf32> to vector<2x16xf32>
    %318 = vector.shape_cast %314 : vector<2x16xf32> to vector<1x1x2x16xf32>
    tpu.vector_store %arg6[%315, %c0_83, %c0_84, %c0_85], %318 {strides = array<i32>} : memref<8x1x2x16xf32, #tpu.memory_space<vmem>>, vector<1x1x2x16xf32>,
    %c6_i32 = arith.constant 6 : i32
    %c0_i32_86 = arith.constant 0 : i32
    %319 = arith.cmpi eq, %arg0, %c0_i32_86 : i32
    %c7_i32_87 = arith.constant 7 : i32
    %320 = arith.subi %c7_i32_87, %c6_i32 : i32
    %321 = arith.select %319, %c6_i32, %320 : i32
    %322 = arith.index_cast %321 : i32 to index
    %c0_88 = arith.constant 0 : index
    %c0_89 = arith.constant 0 : index
    %c0_90 = arith.constant 0 : index
    %323 = vector.load %arg1[%322, %c0_88, %c0_89, %c0_90] : memref<8x1x2x48xf32, #tpu.memory_space<vmem>>, vector<1x1x2x48xf32>
    %324 = vector.shape_cast %323 : vector<1x1x2x48xf32> to vector<2x48xf32>
    %cst_91 = arith.constant dense<0.000000e+00> : vector<2x48xf32>
    %325 = tpu.matmul %312, %1, %cst_91 {dimension_numbers = #tpu.dot_dimension_numbers<[1], [0], [0], [1], [0, 0, 1, 1], [], []>} : vector<2x16xf32>, vector<16x48xf32>, vector<2x48xf32> -> vector<2x48xf32>
    %326 = vector.broadcast %3 : vector<1x48xf32> to vector<2x48xf32>
    %327 = arith.addf %325, %326 : vector<2x48xf32>
    %328 = vector.extract_strided_slice %324 {offsets = [0, 0], sizes = [2, 16], strides = [1, 1]} : vector<2x48xf32> to vector<2x16xf32>
    %329 = vector.extract_strided_slice %327 {offsets = [0, 0], sizes = [2, 16], strides = [1, 1]} : vector<2x48xf32> to vector<2x16xf32>
    %330 = arith.addf %328, %329 : vector<2x16xf32>
    %331 = arith.negf %330 : vector<2x16xf32>
    %332 = math.exp %331 : vector<2x16xf32>
    %cst_92 = arith.constant 1.000000e+00 : f32
    %333 = vector.broadcast %cst_92 : f32 to vector<2x16xf32>
    %334 = arith.addf %333, %332 : vector<2x16xf32>
    %335 = arith.divf %333, %334 : vector<2x16xf32>
    %336 = vector.extract_strided_slice %324 {offsets = [0, 16], sizes = [2, 16], strides = [1, 1]} : vector<2x48xf32> to vector<2x16xf32>
    %337 = vector.extract_strided_slice %327 {offsets = [0, 16], sizes = [2, 16], strides = [1, 1]} : vector<2x48xf32> to vector<2x16xf32>
    %338 = arith.addf %336, %337 : vector<2x16xf32>
    %339 = arith.negf %338 : vector<2x16xf32>
    %340 = math.exp %339 : vector<2x16xf32>
    %cst_93 = arith.constant 1.000000e+00 : f32
    %341 = vector.broadcast %cst_93 : f32 to vector<2x16xf32>
    %342 = arith.addf %341, %340 : vector<2x16xf32>
    %343 = arith.divf %341, %342 : vector<2x16xf32>
    %344 = vector.extract_strided_slice %324 {offsets = [0, 32], sizes = [2, 16], strides = [1, 1]} : vector<2x48xf32> to vector<2x16xf32>
    %345 = vector.extract_strided_slice %327 {offsets = [0, 32], sizes = [2, 16], strides = [1, 1]} : vector<2x48xf32> to vector<2x16xf32>
    %346 = arith.mulf %335, %345 : vector<2x16xf32>
    %347 = arith.addf %344, %346 : vector<2x16xf32>
    %348 = math.tanh %347 : vector<2x16xf32>
    %cst_94 = arith.constant 1.000000e+00 : f32
    %349 = vector.broadcast %cst_94 : f32 to vector<2x16xf32>
    %350 = arith.subf %349, %343 : vector<2x16xf32>
    %351 = arith.mulf %350, %348 : vector<2x16xf32>
    %352 = arith.mulf %343, %312 : vector<2x16xf32>
    %353 = arith.addf %351, %352 : vector<2x16xf32>
    %354 = vector.broadcast %321 : i32 to vector<2x1xi32>
    %355 = arith.cmpi slt, %354, %4 : vector<2x1xi32>
    %356 = arith.extui %355 : vector<2x1xi1> to vector<2x1xi32>
    %357 = arith.sitofp %356 : vector<2x1xi32> to vector<2x1xf32>
    %358 = vector.broadcast %357 : vector<2x1xf32> to vector<2x16xf32>
    %359 = arith.mulf %358, %353 : vector<2x16xf32>
    %cst_95 = arith.constant 1.000000e+00 : f32
    %360 = vector.broadcast %cst_95 : f32 to vector<2x1xf32>
    %361 = arith.subf %360, %357 : vector<2x1xf32>
    %362 = vector.broadcast %361 : vector<2x1xf32> to vector<2x16xf32>
    %363 = arith.mulf %362, %312 : vector<2x16xf32>
    %364 = arith.addf %359, %363 : vector<2x16xf32>
    %365 = vector.broadcast %357 : vector<2x1xf32> to vector<2x16xf32>
    %366 = arith.mulf %365, %353 : vector<2x16xf32>
    %367 = arith.index_cast %321 : i32 to index
    %c0_96 = arith.constant 0 : index
    %c0_97 = arith.constant 0 : index
    %c0_98 = arith.constant 0 : index
    %368 = vector.load %arg6[%367, %c0_96, %c0_97, %c0_98] : memref<8x1x2x16xf32, #tpu.memory_space<vmem>>, vector<1x1x2x16xf32>
    %369 = vector.shape_cast %368 : vector<1x1x2x16xf32> to vector<2x16xf32>
    %370 = vector.shape_cast %366 : vector<2x16xf32> to vector<1x1x2x16xf32>
    tpu.vector_store %arg6[%367, %c0_96, %c0_97, %c0_98], %370 {strides = array<i32>} : memref<8x1x2x16xf32, #tpu.memory_space<vmem>>, vector<1x1x2x16xf32>,
    %c7_i32_99 = arith.constant 7 : i32
    %c0_i32_100 = arith.constant 0 : i32
    %371 = arith.cmpi eq, %arg0, %c0_i32_100 : i32
    %c7_i32_101 = arith.constant 7 : i32
    %372 = arith.subi %c7_i32_101, %c7_i32_99 : i32
    %373 = arith.select %371, %c7_i32_99, %372 : i32
    %374 = arith.index_cast %373 : i32 to index
    %c0_102 = arith.constant 0 : index
    %c0_103 = arith.constant 0 : index
    %c0_104 = arith.constant 0 : index
    %375 = vector.load %arg1[%374, %c0_102, %c0_103, %c0_104] : memref<8x1x2x48xf32, #tpu.memory_space<vmem>>, vector<1x1x2x48xf32>
    %376 = vector.shape_cast %375 : vector<1x1x2x48xf32> to vector<2x48xf32>
    %cst_105 = arith.constant dense<0.000000e+00> : vector<2x48xf32>
    %377 = tpu.matmul %364, %1, %cst_105 {dimension_numbers = #tpu.dot_dimension_numbers<[1], [0], [0], [1], [0, 0, 1, 1], [], []>} : vector<2x16xf32>, vector<16x48xf32>, vector<2x48xf32> -> vector<2x48xf32>
    %378 = vector.broadcast %3 : vector<1x48xf32> to vector<2x48xf32>
    %379 = arith.addf %377, %378 : vector<2x48xf32>
    %380 = vector.extract_strided_slice %376 {offsets = [0, 0], sizes = [2, 16], strides = [1, 1]} : vector<2x48xf32> to vector<2x16xf32>
    %381 = vector.extract_strided_slice %379 {offsets = [0, 0], sizes = [2, 16], strides = [1, 1]} : vector<2x48xf32> to vector<2x16xf32>
    %382 = arith.addf %380, %381 : vector<2x16xf32>
    %383 = arith.negf %382 : vector<2x16xf32>
    %384 = math.exp %383 : vector<2x16xf32>
    %cst_106 = arith.constant 1.000000e+00 : f32
    %385 = vector.broadcast %cst_106 : f32 to vector<2x16xf32>
    %386 = arith.addf %385, %384 : vector<2x16xf32>
    %387 = arith.divf %385, %386 : vector<2x16xf32>
    %388 = vector.extract_strided_slice %376 {offsets = [0, 16], sizes = [2, 16], strides = [1, 1]} : vector<2x48xf32> to vector<2x16xf32>
    %389 = vector.extract_strided_slice %379 {offsets = [0, 16], sizes = [2, 16], strides = [1, 1]} : vector<2x48xf32> to vector<2x16xf32>
    %390 = arith.addf %388, %389 : vector<2x16xf32>
    %391 = arith.negf %390 : vector<2x16xf32>
    %392 = math.exp %391 : vector<2x16xf32>
    %cst_107 = arith.constant 1.000000e+00 : f32
    %393 = vector.broadcast %cst_107 : f32 to vector<2x16xf32>
    %394 = arith.addf %393, %392 : vector<2x16xf32>
    %395 = arith.divf %393, %394 : vector<2x16xf32>
    %396 = vector.extract_strided_slice %376 {offsets = [0, 32], sizes = [2, 16], strides = [1, 1]} : vector<2x48xf32> to vector<2x16xf32>
    %397 = vector.extract_strided_slice %379 {offsets = [0, 32], sizes = [2, 16], strides = [1, 1]} : vector<2x48xf32> to vector<2x16xf32>
    %398 = arith.mulf %387, %397 : vector<2x16xf32>
    %399 = arith.addf %396, %398 : vector<2x16xf32>
    %400 = math.tanh %399 : vector<2x16xf32>
    %cst_108 = arith.constant 1.000000e+00 : f32
    %401 = vector.broadcast %cst_108 : f32 to vector<2x16xf32>
    %402 = arith.subf %401, %395 : vector<2x16xf32>
    %403 = arith.mulf %402, %400 : vector<2x16xf32>
    %404 = arith.mulf %395, %364 : vector<2x16xf32>
    %405 = arith.addf %403, %404 : vector<2x16xf32>
    %406 = vector.broadcast %373 : i32 to vector<2x1xi32>
    %407 = arith.cmpi slt, %406, %4 : vector<2x1xi32>
    %408 = arith.extui %407 : vector<2x1xi1> to vector<2x1xi32>
    %409 = arith.sitofp %408 : vector<2x1xi32> to vector<2x1xf32>
    %410 = vector.broadcast %409 : vector<2x1xf32> to vector<2x16xf32>
    %411 = arith.mulf %410, %405 : vector<2x16xf32>
    %cst_109 = arith.constant 1.000000e+00 : f32
    %412 = vector.broadcast %cst_109 : f32 to vector<2x1xf32>
    %413 = arith.subf %412, %409 : vector<2x1xf32>
    %414 = vector.broadcast %413 : vector<2x1xf32> to vector<2x16xf32>
    %415 = arith.mulf %414, %364 : vector<2x16xf32>
    %416 = arith.addf %411, %415 : vector<2x16xf32>
    %417 = vector.broadcast %409 : vector<2x1xf32> to vector<2x16xf32>
    %418 = arith.mulf %417, %405 : vector<2x16xf32>
    %419 = arith.index_cast %373 : i32 to index
    %c0_110 = arith.constant 0 : index
    %c0_111 = arith.constant 0 : index
    %c0_112 = arith.constant 0 : index
    %420 = vector.load %arg6[%419, %c0_110, %c0_111, %c0_112] : memref<8x1x2x16xf32, #tpu.memory_space<vmem>>, vector<1x1x2x16xf32>
    %421 = vector.shape_cast %420 : vector<1x1x2x16xf32> to vector<2x16xf32>
    %422 = vector.shape_cast %418 : vector<2x16xf32> to vector<1x1x2x16xf32>
    tpu.vector_store %arg6[%419, %c0_110, %c0_111, %c0_112], %422 {strides = array<i32>} : memref<8x1x2x16xf32, #tpu.memory_space<vmem>>, vector<1x1x2x16xf32>,
    %c8_i32 = arith.constant 8 : i32
    %c0_113 = arith.constant 0 : index
    %c0_114 = arith.constant 0 : index
    %c0_115 = arith.constant 0 : index
    %423 = vector.load %arg7[%c0_113, %c0_114, %c0_115] : memref<1x2x16xf32, #tpu.memory_space<vmem>>, vector<1x2x16xf32>
    %424 = vector.shape_cast %423 : vector<1x2x16xf32> to vector<2x16xf32>
    %425 = vector.shape_cast %416 : vector<2x16xf32> to vector<1x2x16xf32>
    tpu.vector_store %arg7[%c0_113, %c0_114, %c0_115], %425 {strides = array<i32>} : memref<1x2x16xf32, #tpu.memory_space<vmem>>, vector<1x2x16xf32>,
    return
  }
  func.func @transform_0(%arg0: i32) -> (i32, i32, i32, i32) {
    %c0_i32 = arith.constant 0 : i32
    %c0_i32_0 = arith.constant 0 : i32
    %c0_i32_1 = arith.constant 0 : i32
    %c0_i32_2 = arith.constant 0 : i32
    return %c0_i32, %arg0, %c0_i32_0, %c0_i32_1 : i32, i32, i32, i32
  }
  func.func @transform_1(%arg0: i32) -> (i32, i32, i32) {
    %c0_i32 = arith.constant 0 : i32
    %c0_i32_0 = arith.constant 0 : i32
    %c0_i32_1 = arith.constant 0 : i32
    return %arg0, %c0_i32, %c0_i32_0 : i32, i32, i32
  }
  func.func @transform_2(%arg0: i32) -> (i32, i32, i32) {
    %c0_i32 = arith.constant 0 : i32
    %c0_i32_0 = arith.constant 0 : i32
    %c0_i32_1 = arith.constant 0 : i32
    return %arg0, %c0_i32, %c0_i32_0 : i32, i32, i32
  }
  func.func @transform_3(%arg0: i32) -> (i32, i32, i32) {
    %c0_i32 = arith.constant 0 : i32
    %c0_i32_0 = arith.constant 0 : i32
    %c0_i32_1 = arith.constant 0 : i32
    return %arg0, %c0_i32, %c0_i32_0 : i32, i32, i32
  }
  func.func @transform_4(%arg0: i32) -> (i32, i32) {
    %c0_i32 = arith.constant 0 : i32
    %c0_i32_0 = arith.constant 0 : i32
    %c0_i32_1 = arith.constant 0 : i32
    return %c0_i32, %c0_i32_0 : i32, i32
  }
  func.func @transform_5(%arg0: i32) -> (i32, i32, i32, i32) {
    %c0_i32 = arith.constant 0 : i32
    %c0_i32_0 = arith.constant 0 : i32
    %c0_i32_1 = arith.constant 0 : i32
    %c0_i32_2 = arith.constant 0 : i32
    return %c0_i32, %arg0, %c0_i32_0, %c0_i32_1 : i32, i32, i32, i32
  }
  func.func @transform_6(%arg0: i32) -> (i32, i32, i32) {
    %c0_i32 = arith.constant 0 : i32
    %c0_i32_0 = arith.constant 0 : i32
    %c0_i32_1 = arith.constant 0 : i32
    return %arg0, %c0_i32, %c0_i32_0 : i32, i32, i32
  }
}

</mosaic_0001>

<bundles_post_ra>
// kernel: tpu_custom_call.1
= control target key start
LH: loop header
LB: loop body
LE: loop exit
PB: predicated region body
PF: predicated region fallthrough
CT: control target
= control target key end

     0   :  { %s2635_s0 = inlined_call_operand.hbm [shape: f32[8,2,2,48], index: 0, kind: input, shape index: {}]   ;;  %s2636_s1 = inlined_call_operand.hbm [shape: f32[2,16,48], index: 1, kind: input, shape index: {}]   ;;  %s2637_s2 = inlined_call_operand.vmem [shape: f32[2,1,48], index: 2, kind: input, shape index: {}]   ;;  %s2638_s3 = inlined_call_operand.vmem [shape: f32[2,2,16], index: 3, kind: input, shape index: {}]   ;;  %s2639_s4 = inlined_call_operand.vmem [shape: s32[2,1], index: 4, kind: input, shape index: {}]   ;;  %s2640_s5 = inlined_call_operand.hbm [shape: f32[8,2,2,16], index: 5, kind: output, shape index: {0}]   ;;  %s2641_s6 = inlined_call_operand.hbm [shape: f32[2,2,16], index: 6, kind: output, shape index: {1}]  }
   0x1   :  { %2652 = sst [smem:[#allocation15_spill]] %s2635_s0 }
   0x2   :  { %12 = vsyncpa [#allocation3], 0 }
   0x3   :  { %14 = vsyncpa [#allocation3 + $0x1], 0 }
   0x4   :  { %15 = vsyncpa [#allocation6], 0 }
   0x5   :  { %17 = vsyncpa [#allocation6 + $0x1], 0 }
   0x6   :  { %18 = vsyncpa [#allocation4], 0 }
   0x7   :  { %20 = vsyncpa [#allocation4 + $0x1], 0 }
   0x8   :  { %21 = vsyncpa [#allocation9], 0 }
   0x9   :  { %23 = vsyncpa [#allocation9 + $0x1], 0  ;;  %s2116_s21 = smov 0   ;;  %s2118_s22 = smov 0  }
   0xa   :  { %s2120_s23 = smov 0   ;;  %s2122_s24 = smov 0  }
   0xb LB: > { %s2137_s25 = sadd.s32 4294967295, %s2060_s24   ;;  %s1619_s26 = sadd.s32 4294967294, %s2060_s24   ;;  %s2060_s24 = sphi %s2122_s24, %s2685_s24   ;;  %s2056_s23 = sphi %s2120_s23, %s2684_s23   ;;  %s2052_s22 = sphi %s2118_s22, %s2683_s22   ;;  %s2048_s21 = sphi %s2116_s21, %s2682_s21  }
   0xc   : > { %s2141_s27 = sadd.s32 1, %s2060_s24   ;;  %s36_s28 = sadd.s32 1, %s2056_s23 }
   0xd   : > { %s33_s29 = ssub.s32 %s2060_s24, %s2141_s27  ;;  %p43_p0 = scmp.ne.s32.totalorder %s2056_s23, %s2052_s22 }
   0xe   : > { %p34_p1 = scmp.eq.s32.totalorder %s33_s29, 0  ;;  %p44_p2 = scmp.eq.s32.totalorder %s2060_s24, 0 }
   0xf   : > { %p49_p3 = scmp.ne.s32.totalorder %s2052_s22, %s2048_s21  ;;  %p2642_p4 = scmp.eq.s32.totalorder %s2137_s25, 0 }
  0x10   : > { %s2153_s30 = scalar_select %p34_p1, %s2056_s23, %s36_s28  }
  0x11   : > { %p2155_p5 = por %p44_p2, %p43_p0  ;;  %p2161_p6 = por %p2642_p4, %p49_p3 }
  0x12   : > { %2653 = sst [smem:[#allocation14_spill]] %s2153_s30  ;;  %p172_p7 = scmp.eq.s32.totalorder %s2137_s25, 1 }
  0x13   : > { %s2655_s8 = scalar_select %p2161_p6, 1, 0 }
  0x14   : > { %p178_p8 = scmp.eq.s32.totalorder %s1619_s26, 1  ;;  %p1799_p10 = scmp.lt.s32.totalorder %s2060_s24, 2 }
  0x15   : > { %p2168_p11 = por %p172_p7, %p43_p0  ;;  %s2177_s11 = sand.u32 1, %s2056_s23  }
  0x16   : > { %p2172_p12 = por %p178_p8, %p49_p3  ;;  %s1623_s12 = sshll.u32 %s2060_s24, 5 }
  0x17   : > { %s2656_s9 = scalar_select %p2168_p11, 1, 0 }
  0x18   : > { %s2657_s10 = scalar_select %p2172_p12, 1, 0 }
  0x19   : > { %s1622_s13 = sshll.u32 %s2177_s11, 4  ;;  %s2658_s0 = sld [smem:[#allocation15_spill]] }
  0x1a   : > { %s231_s17 = scalar_lea.vmem [#allocation2], %s1622_s13  ;;  %p2190_p13 = pnand %p1799_p10, %p2155_p5 }
  0x1b   : > { %s237_s18 = sshll.u32 %s231_s17, 4  ;;  %s228_s20 = scalar_lea.sflag [#allocation3], %s2177_s11  ;;  %s2194_s18 = int_to_ptr.vmem [resolvable:$true] %s237_s18 }
  0x1c   : > { %p1900_p2 = pneg %p2190_p13 }
  0x1f   : > { %s2184_s16 = scalar_lea.hbm %s2658_s0, %s1623_s12  ;;  %s1903_s7 = scalar_lea.hbm %s2658_s0, 512 }
  0x20   : > { %s1898_s26 = scalar_lea.hbm %s2184_s16, 256  ;;  %p1904_p5 = scmp.lt.u32.totalorder %s2184_s16, %s2658_s0 }
  0x21   : > { %p1899_p1 = scmp.ne.s32.totalorder %s2184_s16, %s1898_s26  ;;  %p1905_p8 = scmp.lt.u32.totalorder %s1903_s7, %s1898_s26 }
  0x22   : > { %p1907_p9 = scmp.lt.u32.totalorder %s1898_s26, %s2184_s16 }
  0x23   : > { %p1901_p3 = pnand %p1900_p2, %p1899_p1  ;;  %p1906_p10 = por %p1905_p8, %p1904_p5 }
  0x25   : > { %p1902_p7 = pneg %p1901_p3  ;;  %p1908_p4 = por %p1907_p9, %p1906_p10 }
  0x27   : > { %p1909_p0 = pnand %p1908_p4, %p1902_p7 }
  0x29   : > { %1912 = shalt.err (!%p1909_p0)
}
  0x2a   : > { %s1913_s15 = scalar_lea.vmem %s2194_s18, 256  ;;  %s2062_s17 = smov [#allocation2]  }
  0x2b   : > { %p1914_p1 = scmp.ne.s32.totalorder %s2194_s18, %s1913_s15  ;;  %s1918_s28 = sshll.u32 %s2062_s17, 4  ;;  %s1919_s28 = int_to_ptr.vmem [resolvable:$false] %s1918_s28 }
  0x2c   : > { %s1920_s29 = scalar_lea.vmem %s1919_s28, 512  ;;  %p1921_p11 = scmp.lt.s32.totalorder %s2194_s18, %s1919_s28 }
  0x2d   : > { %p1916_p3 = pnand %p1914_p1, %p1900_p2  ;;  %p1922_p5 = scmp.lt.s32.totalorder %s1920_s29, %s1913_s15 }
  0x2f   : > { %p1917_p12 = pneg %p1916_p3  ;;  %p1923_p8 = por %p1922_p5, %p1921_p11 }
  0x31   : > { %p1924_p9 = pnand %p1923_p8, %p1917_p12 }
  0x33   : > { %1927 = shalt.err (!%p1924_p9)
}
  0x34   : > { %s2063_s26 = smov 64   ;;  %s2064_s7 = smov 32  }
  0x35   : > { %s2065_s12 = smov 2   ;;  %p279_p4 = scmp.lt.s32.totalorder %s2060_s24, 3 }
  0x36   : > { %1788 = dma.hbm_to_vmem [thread:$0]  (!%p2190_p13), %s2184_s16, 256, %s2194_s18, %s228_s20, %s2063_s26, %s2064_s7, %s2065_s12  }
  0x37   : > { %s1672_s14 = sshll.u32 %s2060_s24, 8  ;;  %p2660_p11 = scmp.ge.s32.totalorder %s2060_s24, 1 }
  0x38   : > { %s2236_s29 = scalar_lea.hbm %s2636_s1, %s1672_s14  ;;  %s251_s0 = scalar_lea.vmem [#allocation5], %s1622_s13 }
  0x39   : > { %p2229_p12 = pnand %p2660_p11, %p279_p4  ;;  %s258_s30 = sshll.u32 %s251_s0, 4  ;;  %s2240_s30 = int_to_ptr.vmem [resolvable:$true] %s258_s30 }
  0x3a   : > { %s248_s16 = scalar_lea.sflag [#allocation6], %s2177_s11  ;;  %s1928_s18 = scalar_lea.hbm %s2236_s29, 256 }
  0x3b   : > { %p1929_p0 = scmp.ne.s32.totalorder %s2236_s29, %s1928_s18  ;;  %s1933_s7 = scalar_lea.hbm %s2636_s1, 512 }
  0x3c   : > { %p1934_p1 = scmp.lt.u32.totalorder %s2236_s29, %s2636_s1  ;;  %p1935_p3 = scmp.lt.u32.totalorder %s1933_s7, %s1928_s18 }
  0x3d   : > { %p1931_p7 = pnand %p1929_p0, %p1900_p2  ;;  %p1937_p8 = scmp.lt.u32.totalorder %s1928_s18, %s2236_s29 }
  0x3e   : > { %p1936_p5 = por %p1935_p3, %p1934_p1 }
  0x3f   : > { %p1932_p10 = pneg %p1931_p7 }
  0x40   : > { %p1938_p9 = por %p1937_p8, %p1936_p5 }
  0x42   : > { %p1939_p4 = pnand %p1938_p9, %p1932_p10 }
  0x44   : > { %1942 = shalt.err (!%p1939_p4)
}
  0x45   : > { %s1943_s0 = scalar_lea.vmem %s2240_s30, 256  ;;  %s2066_s13 = smov [#allocation5]  }
  0x46   : > { %p1944_p11 = scmp.ne.s32.totalorder %s2240_s30, %s1943_s0  ;;  %s1948_s17 = sshll.u32 %s2066_s13, 4  ;;  %s1949_s17 = int_to_ptr.vmem [resolvable:$false] %s1948_s17 }
  0x47   : > { %s1950_s28 = scalar_lea.vmem %s1949_s17, 512  ;;  %p1951_p6 = scmp.lt.s32.totalorder %s2240_s30, %s1949_s17 }
  0x48   : > { %p1946_p0 = pnand %p1944_p11, %p1900_p2  ;;  %p1952_p1 = scmp.lt.s32.totalorder %s1950_s28, %s1943_s0 }
  0x4a   : > { %p1947_p7 = pneg %p1946_p0  ;;  %p1953_p3 = por %p1952_p1, %p1951_p6 }
  0x4c   : > { %p1954_p5 = pnand %p1953_p3, %p1947_p7 }
  0x4e   : > { %1957 = shalt.err (!%p1954_p5)
}
  0x4f   : > { %s2067_s18 = smov 128   ;;  %s2068_s20 = smov 8  }
  0x50   : > { %1791 = dma.hbm_to_vmem [thread:$0]  (!%p2190_p13), %s2236_s29, 256, %s2240_s30, %s248_s16, %s2067_s18, %s2067_s18, %s2068_s20  }
  0x51   : > { %283 = sbr.rel (%p2229_p12) target bundleno = 5712 (0x1650), region = 40  ;;  %s2271_s26 = sand.u32 (!%p2229_p12), 1, %s2052_s22  }
  0x52   : > { %s2274_s7 = sshll.u32 (!%p2229_p12), %s2271_s26, 4  ;;  %s286_s12 = scalar_lea.sflag (!%p2229_p12), [#allocation3], %s2271_s26 }
  0x53   : > { %s2278_s14 = scalar_lea.vmem (!%p2229_p12), [#allocation2], %s2274_s7  ;;  %p2662_p6 = scmp.ne.s32.totalorder (!%p2229_p12), %s2655_s8, 0 }
  0x58   : > { %2031 = dma.done.wait (%p2662_p6), %s286_s12, 256  }
  0x59   : > { %2033 = vsyncadd (%p2662_p6), %s286_s12, 4294967040  ;;  %s295_s30 = scalar_lea.sflag [#allocation6], %s2271_s26  ;;  %s298_s11 = scalar_lea.vmem [#allocation5], %s2274_s7 }
  0x5a   : > { %2035 = dma.done.wait (%p2662_p6), %s295_s30, 256  }
  0x5b   : > { %2037 = vsyncadd (%p2662_p6), %s295_s30, 4294967040  ;;  %p344_p13 = scmp.lt.s32.totalorder %s2137_s25, 1  ;;  %v2069_v0 = vmov 0.0|0.0   ;;  %vm2070_vm0 = vmmov 0   ;;  %v2071_v1 = vmov 0.0   ;;  %p2663_p2 = scmp.eq.s32.totalorder %s2137_s25, 0 }
  0x5c   : > { %1753 = vmatprep.subr.bf16.mxu0 %v2069_v0  ;;  %1701 = vmatprep.mubr.msk.f32.mxu0 %vm2070_vm0, %v2071_v1  ;;  %v2072_v2 = vmov 0   ;;  %v351_v4 = vld [vmem:[%s298_s11] sm:$0xff]  ;;  %v352_v5 = vld [vmem:[%s298_s11 + $0x8] sm:$0xff]  ;;  %vm367_vm2 = vcmask 130048   ;;  %s2073_s28 = smov 16   ;;  %s2074_s30 = smov 96  }
  0x5d   : > { %s2296_s19 = scalar_select %p2663_p2, 0, 7  ;;  %1848 = vset.pattern.permute.xlu1 %v2072_v2  ;;  %1756 = vmatprep.subr.bf16.mxu1 %v2069_v0  ;;  %v2309_v6 = vpack.c.bf16 %v352_v5, %v351_v4  ;;  %v2314_v7 = vld [vmem:[%s2639_s4] sm:$0x3]  ;;  %vm497_vm10 = vcmask 123904  }
  0x5e   : > { %s2299_s15 = scalar_select %p344_p13, %s2137_s25, 1  ;;  %1708 = vmatprep.mubr.msk.f32.mxu1 %vm2070_vm0, %v2071_v1  ;;  %1849 = vset.pattern.permute.xlu0 %v2072_v2 }
  0x5f   : > { %v470_v3 = vstv %s2296_s19  ;;  %1755 = vmatpush3.bf16.msra.mxu0 %v2309_v6  ;;  %1758 = vmatpush3.bf16.msra.mxu1 %v2309_v6  ;;  %s1633_s11 = sshll.u32 %s2296_s19, 1  ;;  %s2076_s29 = smov 112  }
  0x60   : > { %s1632_s8 = sshll.u32 %s2299_s15, 1  ;;  %vm471_vm1 = vcmp.lt.s32.totalorder %v470_v3, %v2314_v7  ;;  %1759 = vmatprep.subr.bf16.mxu0 %v2069_v0  ;;  %1762 = vmatprep.subr.bf16.mxu1 %v2069_v0  ;;  %s346_s12 = scalar_lea.vmem %s2637_s2, %s2299_s15 }
  0x61   : > { %s350_s0 = scalar_lea.vmem %s2638_s3, %s1632_s8  ;;  %v1637_v9 = vsel %vm471_vm1, 1.0, %v2071_v1  ;;  %v2332_v11 = vld [vmem:[%s346_s12] ss:$0 sm:$0xff]  ;;  %s359_s8 = scalar_lea.vmem %s2278_s14, %s1633_s11 [#allocation2] }
  0x62   : > { %v355_v8 = vld [vmem:[%s350_s0] sm:$0x3]  ;;  %v480_v10 = vsub.f32 1.0, %v1637_v9  ;;  %s2651_s15 = smov 32   ;;  %p2664_p12 = pmov %p2663_p2 }
  0x63   : > { %1702 = vmatmul.mubr.msk.f32.vlgmr.msra.gmra.mrb[0].mxu0 %vm367_vm2, %v355_v8  ;;  %v360_v15 = vld [vmem:[%s359_s8] sm:$0x3]  ;;  %p2665_p10 = pmov %p2663_p2  ;;  %p2666_p8 = pmov %p2663_p2 }
  0x64   : > { %483 = vperm.xlu1 %1848, %v480_v10   ;;  %1761 = vmatpush3.bf16.msra.mxu0 %v2309_v6  ;;  %s2354_s16 = scalar_select %p2664_p12, 1, 6 }
  0x65   : > { %1715 = vmatprep.mubr.msk.f32.mxu0 %vm2070_vm0, %v2071_v1  ;;  %1765 = vmatprep.subr.bf16.mxu0 %v2069_v0  ;;  %s2378_s17 = scalar_select %p2665_p10, 2, 5 }
  0x66   : > { %v604_v40 = vstv %s2354_s16  ;;  %s2648_s0 = sshll.u32 %s2354_s16, 1  ;;  %p2667_p9 = pmov %p2663_p2 }
  0x67   : > { %vm605_vm3 = vcmp.lt.s32.totalorder %v604_v40, %v2314_v7  ;;  %s501_s13 = scalar_lea.vmem %s2278_s14, %s2648_s0 [#allocation2]  ;;  %v733_v5 = vstv %s2378_s17  ;;  %p2668_p4 = pmov %p2663_p2 }
  0x68   : > { %476 = vperm.xlu1 %1848, %v1637_v9   ;;  %v1641_v43 = vsel %vm605_vm3, 1.0, %v2071_v1  ;;  %v502_v44 = vld [vmem:[%s501_s13] sm:$0x3]  ;;  %vm734_vm4 = vcmp.lt.s32.totalorder %v733_v5, %v2314_v7  ;;  %s2402_s20 = scalar_select %p2666_p8, 3, 4 }
  0x69   : > { %v614_v52 = vsub.f32 1.0, %v1641_v43  ;;  %s2425_s13 = scalar_select %p2667_p9, 4, 3 }
  0x6a   : > { %s2646_s12 = sshll.u32 %s2402_s20, 1  ;;  %p2669_p11 = pmov %p2663_p2 }
  0x6b   : > { %s759_s8 = scalar_lea.vmem %s2278_s14, %s2646_s12 [#allocation2]  ;;  %p2670_p0 = pmov %p2663_p2 }
  0x6c   : > { %465 = vrot.lane.b32.xlu1 %v355_v8, %s2073_s28  ;;  %p2677_p1 = scmp.ne.s32.totalorder %s2656_s9, 0 }
  0xe3   : > { %v484_v26 = vpop.permute.xlu1 %483 }
  0xe4   : > { %v486_v27 = vmul.f32 %v484_v26, %v355_v8 }
  0xe7   : > { %v477_v28 = vpop.permute.xlu1 %476 }
  0xeb   : > { %v466_v29 = vpop.permute.xlu1 %465 }
 0x136   : > { %v437_v12 = vpop.f32.mrb[0].mxu0 }
 0x137   : > { %v438_v13 = vadd.f32 %v2332_v11, %v437_v12  ;;  %v1703_v14 = vpop.f32.mrb[1].mxu0  ;;  %v1645_v12 = vsel %vm734_vm4, 1.0, %v2071_v1 }
 0x139   : > { %449 = vrot.lane.b32.xlu0 %v438_v13, %s2074_s30  ;;  %v441_v16 = vadd.f32 %v438_v13, %v360_v15 }
 0x13b   : > { %v1636_v17 = vmul.f32 -1.442695, %v441_v16 }
 0x13d   : > { %1850 = vpow2.f32 %v1636_v17 }
 0x147   : > { %v1851_v18 = vpop.eup %1850 }
 0x148   : > { %v445_v19 = vadd.f32 1.0, %v1851_v18 }
 0x14a   : > { %1852 = vrcp.f32 %v445_v19 }
 0x154   : > { %v1853_v20 = vpop.eup %1852 }
 0x155   : > { %v459_v30 = vsub.f32 1.0, %v1853_v20  ;;  %v468_v32 = vmul.f32 %v1853_v20, %v466_v29 }
 0x1ab   : > { %v450_v21 = vpop.permute.xlu0 %449 }
 0x1ac   : > { %v452_v22 = vmul.f32 %v1853_v20, %v450_v21  ;;  %v743_v21 = vsub.f32 1.0, %v1645_v12 }
 0x1ae   : > { %454 = vrot.lane.b32.xlu0 %v452_v22, %s2651_s15 }
 0x220   : > { %v455_v23 = vpop.permute.xlu0 %454 }
 0x221   : > { %v457_v24 = vadd.f32 %v455_v23, %v360_v15 }
 0x223   : > { %1854 = vtanh.f32 %v457_v24 }
 0x22d   : > { %v1855_v25 = vpop.eup %1854 }
 0x22e   : > { %461 = vrot.lane.b32.xlu0 %v1855_v25, %s2076_s29 }
 0x232   : > { %488 = vrot.lane.b32.xlu0 %v486_v27, %s2073_s28  ;;  %s2650_s28 = sshll.u32 %s2378_s17, 1 }
 0x233   : > { %s630_s18 = scalar_lea.vmem %s2278_s14, %s2650_s28 [#allocation2] }
 0x234   : > { %v631_v13 = vld [vmem:[%s630_s18] sm:$0x3]  ;;  %s2645_s18 = sshll.u32 %s2425_s13, 1 }
 0x2a0   : > { %v462_v31 = vpop.permute.xlu0 %461 }
 0x2a1   : > { %v464_v33 = vmul.f32 %v462_v31, %v459_v30 }
 0x2a3   : > { %v469_v34 = vadd.f32 %v468_v32, %v464_v33 }
 0x2a4   : > { %v489_v35 = vpop.permute.xlu0 %488 }
 0x2a5   : > { %v2343_v36 = vmul.f32 %v477_v28, %v469_v34 }
 0x2a7   : > { %v491_v37 = vadd.f32 %v489_v35, %v2343_v36 }
 0x2a9   : > { %504 = vrot.lane.b32.xlu1 %v491_v37, %s2076_s29 }
 0x31b   : > { %v505_v38 = vpop.permute.xlu1 %504 }
 0x31c   : > { %1709 = vmatmul.mubr.msk.f32.vlgmr.msra.gmra.mrb[0].mxu1 %vm367_vm2, %v505_v38 }
 0x31d   : > { %1764 = vmatpush3.bf16.msra.mxu1 %v2309_v6  ;;  %1722 = vmatprep.mubr.msk.f32.mxu1 %vm2070_vm0, %v2071_v1 }
 0x31e   : > { %1768 = vmatprep.subr.bf16.mxu1 %v2069_v0 }
 0x3ef   : > { %v574_v39 = vpop.f32.mrb[0].mxu1 }
 0x3f0   : > { %v575_v41 = vadd.f32 %v2332_v11, %v574_v39  ;;  %v1710_v42 = vpop.f32.mrb[1].mxu1 }
 0x3f2   : > { %586 = vrot.lane.b32.xlu0 %v575_v41, %s2074_s30  ;;  %v578_v45 = vadd.f32 %v575_v41, %v502_v44 }
 0x3f4   : > { %v1640_v46 = vmul.f32 -1.442695, %v578_v45 }
 0x3f6   : > { %610 = vperm.xlu0 %1849, %v1641_v43   ;;  %1856 = vpow2.f32 %v1640_v46 }
 0x400   : > { %v1857_v47 = vpop.eup %1856 }
 0x401   : > { %v582_v48 = vadd.f32 1.0, %v1857_v47 }
 0x403   : > { %1858 = vrcp.f32 %v582_v48 }
 0x40d   : > { %v1859_v49 = vpop.eup %1858 }
 0x40e   : > { %v596_v57 = vsub.f32 1.0, %v1859_v49  ;;  %v602_v60 = vmul.f32 %v1859_v49, %v491_v37 }
 0x464   : > { %v587_v50 = vpop.permute.xlu0 %586 }
 0x465   : > { %v589_v51 = vmul.f32 %v1859_v49, %v587_v50 }
 0x467   : > { %591 = vrot.lane.b32.xlu1 %v589_v51, %s2651_s15 }
 0x46b   : > { %617 = vperm.xlu1 %1848, %v614_v52  }
 0x475   : > { %v611_v61 = vpop.permute.xlu0 %610 }
 0x4d9   : > { %v592_v53 = vpop.permute.xlu1 %591 }
 0x4da   : > { %v594_v54 = vadd.f32 %v592_v53, %v502_v44 }
 0x4dc   : > { %1860 = vtanh.f32 %v594_v54 }
 0x4e6   : > { %v1861_v55 = vpop.eup %1860 }
 0x4e7   : > { %598 = vrot.lane.b32.xlu1 %v1861_v55, %s2076_s29 }
 0x4ea   : > { %v618_v56 = vpop.permute.xlu1 %617 }
 0x4eb   : > { %v620_v63 = vmul.f32 %v618_v56, %v491_v37  ;;  %v862_v37 = vstv %s2402_s20 }
 0x4ec   : > { %vm863_vm5 = vcmp.lt.s32.totalorder %v862_v37, %v2314_v7 }
 0x4ed   : > { %v1649_v41 = vsel %vm863_vm5, 1.0, %v2071_v1 }
 0x4ee   : > { %v872_v49 = vsub.f32 1.0, %v1649_v41 }
 0x559   : > { %v599_v58 = vpop.permute.xlu1 %598 }
 0x55a   : > { %v601_v59 = vmul.f32 %v599_v58, %v596_v57 }
 0x55c   : > { %v603_v62 = vadd.f32 %v602_v60, %v601_v59 }
 0x55e   : > { %v2367_v2 = vmul.f32 %v611_v61, %v603_v62 }
 0x560   : > { %v621_v3 = vadd.f32 %v620_v63, %v2367_v2 }
 0x562   : > { %633 = vrot.lane.b32.xlu0 %v621_v3, %s2076_s29 }
 0x5d4   : > { %v634_v4 = vpop.permute.xlu0 %633 }
 0x5d5   : > { %1716 = vmatmul.mubr.msk.f32.vlgmr.msra.gmra.mrb[2].mxu0 %vm367_vm2, %v634_v4 }
 0x5d6   : > { %1767 = vmatpush3.bf16.msra.mxu0 %v2309_v6  ;;  %1729 = vmatprep.mubr.msk.f32.mxu0 %vm2070_vm0, %v2071_v1 }
 0x5d7   : > { %1771 = vmatprep.subr.bf16.mxu0 %v2069_v0 }
 0x6a8   : > { %v703_v8 = vpop.f32.mrb[2].mxu0 }
 0x6a9   : > { %v704_v9 = vadd.f32 %v2332_v11, %v703_v8  ;;  %v1717_v10 = vpop.f32.mrb[3].mxu0 }
 0x6ab   : > { %715 = vrot.lane.b32.xlu1 %v704_v9, %s2074_s30  ;;  %v707_v14 = vadd.f32 %v704_v9, %v631_v13 }
 0x6ad   : > { %v1644_v15 = vmul.f32 -1.442695, %v707_v14 }
 0x6af   : > { %739 = vperm.xlu1 %1848, %v1645_v12   ;;  %1862 = vpow2.f32 %v1644_v15 }
 0x6b9   : > { %v1863_v16 = vpop.eup %1862 }
 0x6ba   : > { %v711_v17 = vadd.f32 1.0, %v1863_v16 }
 0x6bc   : > { %1864 = vrcp.f32 %v711_v17 }
 0x6c6   : > { %v1865_v18 = vpop.eup %1864 }
 0x6c7   : > { %v725_v26 = vsub.f32 1.0, %v1865_v18  ;;  %v731_v28 = vmul.f32 %v1865_v18, %v621_v3 }
 0x71d   : > { %v716_v19 = vpop.permute.xlu1 %715 }
 0x71e   : > { %v718_v20 = vmul.f32 %v1865_v18, %v716_v19 }
 0x720   : > { %720 = vrot.lane.b32.xlu0 %v718_v20, %s2651_s15 }
 0x724   : > { %746 = vperm.xlu0 %1849, %v743_v21  }
 0x72e   : > { %v740_v25 = vpop.permute.xlu1 %739 }
 0x792   : > { %v721_v22 = vpop.permute.xlu0 %720 }
 0x793   : > { %v723_v23 = vadd.f32 %v721_v22, %v631_v13 }
 0x795   : > { %1866 = vtanh.f32 %v723_v23 }
 0x79f   : > { %v1867_v24 = vpop.eup %1866 }
 0x7a0   : > { %727 = vrot.lane.b32.xlu1 %v1867_v24, %s2076_s29 }
 0x7a3   : > { %v747_v30 = vpop.permute.xlu0 %746 }
 0x7a4   : > { %v749_v32 = vmul.f32 %v747_v30, %v621_v3  ;;  %v991_v3 = vstv %s2425_s13 }
 0x7a5   : > { %vm992_vm6 = vcmp.lt.s32.totalorder %v991_v3, %v2314_v7 }
 0x7a6   : > { %v1653_v9 = vsel %vm992_vm6, 1.0, %v2071_v1 }
 0x7a7   : > { %v1001_v19 = vsub.f32 1.0, %v1653_v9 }
 0x812   : > { %v728_v27 = vpop.permute.xlu1 %727 }
 0x813   : > { %v730_v29 = vmul.f32 %v728_v27, %v725_v26 }
 0x815   : > { %v732_v31 = vadd.f32 %v731_v28, %v730_v29 }
 0x817   : > { %v2391_v33 = vmul.f32 %v740_v25, %v732_v31 }
 0x819   : > { %v750_v34 = vadd.f32 %v749_v32, %v2391_v33 }
 0x81b   : > { %762 = vrot.lane.b32.xlu0 %v750_v34, %s2076_s29 }
 0x88d   : > { %v763_v35 = vpop.permute.xlu0 %762 }
 0x88e   : > { %1723 = vmatmul.mubr.msk.f32.vlgmr.msra.gmra.mrb[2].mxu1 %vm367_vm2, %v763_v35 }
 0x88f   : > { %1770 = vmatpush3.bf16.msra.mxu1 %v2309_v6  ;;  %1736 = vmatprep.mubr.msk.f32.mxu1 %vm2070_vm0, %v2071_v1 }
 0x890   : > { %1774 = vmatprep.subr.bf16.mxu1 %v2069_v0  ;;  %v760_v0 = vld [vmem:[%s759_s8] sm:$0x3]  ;;  %s888_s8 = scalar_lea.vmem %s2278_s14, %s2645_s18 [#allocation2] }
 0x891   : > { %v889_v10 = vld [vmem:[%s888_s8] sm:$0x3]  ;;  %s2448_s8 = scalar_select %p2668_p4, 5, 2 }
 0x893   : > { %v1120_v35 = vstv %s2448_s8  ;;  %s2647_s18 = sshll.u32 %s2448_s8, 1 }
 0x894   : > { %vm1121_vm7 = vcmp.lt.s32.totalorder %v1120_v35, %v2314_v7  ;;  %s1017_s12 = scalar_lea.vmem %s2278_s14, %s2647_s18 [#allocation2] }
 0x961   : > { %v832_v38 = vpop.f32.mrb[2].mxu1 }
 0x962   : > { %v833_v39 = vadd.f32 %v2332_v11, %v832_v38  ;;  %v1724_v40 = vpop.f32.mrb[3].mxu1 }
 0x963   : > { %v1018_v40 = vld [vmem:[%s1017_s12] sm:$0x3]  ;;  %s2468_s12 = scalar_select %p2669_p11, 6, 1 }
 0x964   : > { %844 = vrot.lane.b32.xlu1 %v833_v39, %s2074_s30  ;;  %v836_v42 = vadd.f32 %v833_v39, %v760_v0 }
 0x965   : > { %s2649_s18 = sshll.u32 %s2468_s12, 1 }
 0x966   : > { %v1648_v43 = vmul.f32 -1.442695, %v836_v42  ;;  %s1146_s0 = scalar_lea.vmem %s2278_s14, %s2649_s18 [#allocation2] }
 0x968   : > { %868 = vperm.xlu1 %1848, %v1649_v41   ;;  %1868 = vpow2.f32 %v1648_v43 }
 0x972   : > { %v1869_v44 = vpop.eup %1868 }
 0x973   : > { %v840_v45 = vadd.f32 1.0, %v1869_v44 }
 0x975   : > { %1870 = vrcp.f32 %v840_v45 }
 0x97f   : > { %v1871_v46 = vpop.eup %1870 }
 0x980   : > { %v854_v54 = vsub.f32 1.0, %v1871_v46  ;;  %v860_v56 = vmul.f32 %v1871_v46, %v750_v34 }
 0x9d6   : > { %v845_v47 = vpop.permute.xlu1 %844 }
 0x9d7   : > { %v847_v48 = vmul.f32 %v1871_v46, %v845_v47 }
 0x9d9   : > { %849 = vrot.lane.b32.xlu0 %v847_v48, %s2651_s15 }
 0x9dd   : > { %875 = vperm.xlu0 %1849, %v872_v49  }
 0x9e7   : > { %v869_v53 = vpop.permute.xlu1 %868 }
 0xa4b   : > { %v850_v50 = vpop.permute.xlu0 %849 }
 0xa4c   : > { %v852_v51 = vadd.f32 %v850_v50, %v760_v0 }
 0xa4e   : > { %1872 = vtanh.f32 %v852_v51 }
 0xa58   : > { %v1873_v52 = vpop.eup %1872 }
 0xa59   : > { %856 = vrot.lane.b32.xlu1 %v1873_v52, %s2076_s29 }
 0xa5c   : > { %v876_v58 = vpop.permute.xlu0 %875 }
 0xa5d   : > { %v878_v60 = vmul.f32 %v876_v58, %v750_v34 }
 0xacb   : > { %v857_v55 = vpop.permute.xlu1 %856 }
 0xacc   : > { %v859_v57 = vmul.f32 %v857_v55, %v854_v54 }
 0xace   : > { %v861_v59 = vadd.f32 %v860_v56, %v859_v57 }
 0xad0   : > { %v2415_v61 = vmul.f32 %v869_v53, %v861_v59 }
 0xad2   : > { %v879_v62 = vadd.f32 %v878_v60, %v2415_v61 }
 0xad4   : > { %891 = vrot.lane.b32.xlu0 %v879_v62, %s2076_s29 }
 0xb46   : > { %v892_v63 = vpop.permute.xlu0 %891 }
 0xb47   : > { %1730 = vmatmul.mubr.msk.f32.vlgmr.msra.gmra.mrb[4].mxu0 %vm367_vm2, %v892_v63  ;;  %v1249_v63 = vstv %s2468_s12 }
 0xb48   : > { %1773 = vmatpush3.bf16.msra.mxu0 %v2309_v6  ;;  %1743 = vmatprep.mubr.msk.f32.mxu0 %vm2070_vm0, %v2071_v1  ;;  %vm1250_vm8 = vcmp.lt.s32.totalorder %v1249_v63, %v2314_v7 }
 0xc1a   : > { %v961_v4 = vpop.f32.mrb[4].mxu0 }
 0xc1b   : > { %v962_v5 = vadd.f32 %v2332_v11, %v961_v4  ;;  %v1731_v8 = vpop.f32.mrb[5].mxu0 }
 0xc1c   : > { %v1661_v8 = vsel %vm1250_vm8, 1.0, %v2071_v1 }
 0xc1d   : > { %973 = vrot.lane.b32.xlu1 %v962_v5, %s2074_s30  ;;  %v965_v12 = vadd.f32 %v962_v5, %v889_v10 }
 0xc1f   : > { %v1652_v13 = vmul.f32 -1.442695, %v965_v12 }
 0xc21   : > { %997 = vperm.xlu1 %1848, %v1653_v9   ;;  %1874 = vpow2.f32 %v1652_v13  ;;  %v1147_v9 = vld [vmem:[%s1146_s0] sm:$0x3]  ;;  %s2485_s0 = scalar_select %p2670_p0, 7, 0 }
 0xc23   : > { %v1378_v35 = vstv %s2485_s0  ;;  %s1662_s18 = sshll.u32 %s2485_s0, 1 }
 0xc24   : > { %vm1379_vm9 = vcmp.lt.s32.totalorder %v1378_v35, %v2314_v7  ;;  %s1275_s28 = scalar_lea.vmem %s2278_s14, %s1662_s18 [#allocation2]  ;;  %s2508_s14 = scalar_lea.vmem [#allocation7], %s2274_s7 }
 0xc25   : > { %s2672_s7 = sshll.u32 %s2354_s16, 1  ;;  %s2675_s16 = sshll.u32 %s2425_s13, 1 }
 0xc26   : > { %s626_s19 = scalar_lea.vmem %s2508_s14, %s2672_s7 [#allocation7]  ;;  %s1668_s13 = sshll.u32 %s2137_s25, 5 }
 0xc2b   : > { %v1875_v14 = vpop.eup %1874 }
 0xc2c   : > { %v969_v15 = vadd.f32 1.0, %v1875_v14 }
 0xc2e   : > { %1876 = vrcp.f32 %v969_v15 }
 0xc38   : > { %v1877_v16 = vpop.eup %1876 }
 0xc39   : > { %v983_v24 = vsub.f32 1.0, %v1877_v16  ;;  %v989_v26 = vmul.f32 %v1877_v16, %v879_v62 }
 0xc8f   : > { %v974_v17 = vpop.permute.xlu1 %973 }
 0xc90   : > { %v976_v18 = vmul.f32 %v1877_v16, %v974_v17 }
 0xc92   : > { %978 = vrot.lane.b32.xlu0 %v976_v18, %s2651_s15  ;;  %v1259_v18 = vsub.f32 1.0, %v1661_v8 }
 0xc96   : > { %1004 = vperm.xlu0 %1849, %v1001_v19  }
 0xca0   : > { %v998_v23 = vpop.permute.xlu1 %997 }
 0xd04   : > { %v979_v20 = vpop.permute.xlu0 %978 }
 0xd05   : > { %v981_v21 = vadd.f32 %v979_v20, %v889_v10 }
 0xd07   : > { %1878 = vtanh.f32 %v981_v21 }
 0xd11   : > { %v1879_v22 = vpop.eup %1878 }
 0xd12   : > { %985 = vrot.lane.b32.xlu1 %v1879_v22, %s2076_s29 }
 0xd15   : > { %v1005_v28 = vpop.permute.xlu0 %1004 }
 0xd16   : > { %v1007_v30 = vmul.f32 %v1005_v28, %v879_v62 }
 0xd84   : > { %v986_v25 = vpop.permute.xlu1 %985 }
 0xd85   : > { %v988_v27 = vmul.f32 %v986_v25, %v983_v24 }
 0xd87   : > { %v990_v29 = vadd.f32 %v989_v26, %v988_v27 }
 0xd89   : > { %v2438_v31 = vmul.f32 %v998_v23, %v990_v29 }
 0xd8b   : > { %v1008_v32 = vadd.f32 %v1007_v30, %v2438_v31 }
 0xd8d   : > { %1020 = vrot.lane.b32.xlu0 %v1008_v32, %s2076_s29 }
 0xdff   : > { %v1021_v34 = vpop.permute.xlu0 %1020 }
 0xe00   : > { %1737 = vmatmul.mubr.msk.f32.vlgmr.msra.gmra.mrb[4].mxu1 %vm367_vm2, %v1021_v34 }
 0xe01   : > { %1776 = vmatpush3.bf16.msra.mxu1 %v2309_v6  ;;  %1750 = vmatprep.mubr.msk.f32.mxu1 %vm2070_vm0, %v2071_v1  ;;  %v1657_v6 = vsel %vm1121_vm7, 1.0, %v2071_v1 }
 0xe02   : > { %v1130_v47 = vsub.f32 1.0, %v1657_v6 }
 0xed3   : > { %v1090_v37 = vpop.f32.mrb[4].mxu1 }
 0xed4   : > { %v1091_v38 = vadd.f32 %v2332_v11, %v1090_v37  ;;  %v1738_v39 = vpop.f32.mrb[5].mxu1 }
 0xed6   : > { %1102 = vrot.lane.b32.xlu1 %v1091_v38, %s2074_s30  ;;  %v1094_v41 = vadd.f32 %v1091_v38, %v1018_v40 }
 0xed8   : > { %v1656_v0 = vmul.f32 -1.442695, %v1094_v41 }
 0xeda   : > { %1126 = vperm.xlu1 %1848, %v1657_v6   ;;  %1880 = vpow2.f32 %v1656_v0  ;;  %v1665_v6 = vsel %vm1379_vm9, 1.0, %v2071_v1 }
 0xedb   : > { %v1388_v7 = vsub.f32 1.0, %v1665_v6 }
 0xee4   : > { %v1881_v42 = vpop.eup %1880 }
 0xee5   : > { %v1098_v43 = vadd.f32 1.0, %v1881_v42 }
 0xee7   : > { %1882 = vrcp.f32 %v1098_v43 }
 0xef1   : > { %v1883_v44 = vpop.eup %1882 }
 0xef2   : > { %v1112_v52 = vsub.f32 1.0, %v1883_v44  ;;  %v1118_v54 = vmul.f32 %v1883_v44, %v1008_v32 }
 0xf48   : > { %v1103_v45 = vpop.permute.xlu1 %1102 }
 0xf49   : > { %v1105_v46 = vmul.f32 %v1883_v44, %v1103_v45 }
 0xf4b   : > { %1107 = vrot.lane.b32.xlu0 %v1105_v46, %s2651_s15 }
 0xf4f   : > { %1133 = vperm.xlu0 %1849, %v1130_v47  }
 0xf59   : > { %v1127_v51 = vpop.permute.xlu1 %1126 }
 0xfbd   : > { %v1108_v48 = vpop.permute.xlu0 %1107 }
 0xfbe   : > { %v1110_v49 = vadd.f32 %v1108_v48, %v1018_v40  ;;  %v1276_v40 = vld [vmem:[%s1275_s28] sm:$0x3]  ;;  %s2671_s28 = sshll.u32 %s2378_s17, 1 }
 0xfc0   : > { %1884 = vtanh.f32 %v1110_v49 }
 0xfca   : > { %v1885_v50 = vpop.eup %1884 }
 0xfcb   : > { %1114 = vrot.lane.b32.xlu1 %v1885_v50, %s2076_s29 }
 0xfce   : > { %v1134_v56 = vpop.permute.xlu0 %1133 }
 0xfcf   : > { %v1136_v58 = vmul.f32 %v1134_v56, %v1008_v32 }
0x103d   : > { %v1115_v53 = vpop.permute.xlu1 %1114 }
0x103e   : > { %v1117_v55 = vmul.f32 %v1115_v53, %v1112_v52 }
0x1040   : > { %v1119_v57 = vadd.f32 %v1118_v54, %v1117_v55 }
0x1042   : > { %v2461_v59 = vmul.f32 %v1127_v51, %v1119_v57 }
0x1044   : > { %v1137_v60 = vadd.f32 %v1136_v58, %v2461_v59 }
0x1046   : > { %1149 = vrot.lane.b32.xlu0 %v1137_v60, %s2076_s29 }
0x10b8   : > { %v1150_v62 = vpop.permute.xlu0 %1149 }
0x10b9   : > { %1744 = vmatmul.mubr.msk.f32.vlgmr.msra.gmra.mrb[6].mxu0 %vm367_vm2, %v1150_v62 }
0x118c   : > { %v1219_v3 = vpop.f32.mrb[6].mxu0 }
0x118d   : > { %v1220_v4 = vadd.f32 %v2332_v11, %v1219_v3  ;;  %v1745_v5 = vpop.f32.mrb[7].mxu0 }
0x118f   : > { %1231 = vrot.lane.b32.xlu1 %v1220_v4, %s2074_s30  ;;  %v1223_v10 = vadd.f32 %v1220_v4, %v1147_v9 }
0x1191   : > { %v1660_v12 = vmul.f32 -1.442695, %v1223_v10 }
0x1193   : > { %1255 = vperm.xlu1 %1848, %v1661_v8   ;;  %1886 = vpow2.f32 %v1660_v12 }
0x119d   : > { %v1887_v13 = vpop.eup %1886 }
0x119e   : > { %v1227_v14 = vadd.f32 1.0, %v1887_v13 }
0x11a0   : > { %1888 = vrcp.f32 %v1227_v14 }
0x11aa   : > { %v1889_v15 = vpop.eup %1888 }
0x11ab   : > { %v1241_v23 = vsub.f32 1.0, %v1889_v15  ;;  %v1247_v25 = vmul.f32 %v1889_v15, %v1137_v60 }
0x1201   : > { %v1232_v16 = vpop.permute.xlu1 %1231 }
0x1202   : > { %v1234_v17 = vmul.f32 %v1889_v15, %v1232_v16 }
0x1204   : > { %1236 = vrot.lane.b32.xlu0 %v1234_v17, %s2651_s15 }
0x1208   : > { %1262 = vperm.xlu0 %1849, %v1259_v18  }
0x1212   : > { %v1256_v22 = vpop.permute.xlu1 %1255 }
0x1276   : > { %v1237_v19 = vpop.permute.xlu0 %1236 }
0x1277   : > { %v1239_v20 = vadd.f32 %v1237_v19, %v1147_v9 }
0x1279   : > { %1890 = vtanh.f32 %v1239_v20 }
0x1283   : > { %v1891_v21 = vpop.eup %1890 }
0x1284   : > { %1243 = vrot.lane.b32.xlu1 %v1891_v21, %s2076_s29 }
0x1287   : > { %v1263_v27 = vpop.permute.xlu0 %1262 }
0x1288   : > { %v1265_v29 = vmul.f32 %v1263_v27, %v1137_v60 }
0x12f6   : > { %v1244_v24 = vpop.permute.xlu1 %1243 }
0x12f7   : > { %v1246_v26 = vmul.f32 %v1244_v24, %v1241_v23 }
0x12f9   : > { %v1248_v28 = vadd.f32 %v1247_v25, %v1246_v26 }
0x12fb   : > { %v1258_v30 = vmul.f32 %v1256_v22, %v1248_v28 }
0x12fd   : > { %v1266_v32 = vadd.f32 %v1265_v29, %v1258_v30 }
0x12ff   : > { %1278 = vrot.lane.b32.xlu0 %v1266_v32, %s2076_s29 }
0x1371   : > { %v1279_v34 = vpop.permute.xlu0 %1278 }
0x1372   : > { %1751 = vmatmul.mubr.msk.f32.vlgmr.msra.gmra.mrb[6].mxu1 %vm367_vm2, %v1279_v34 }
0x1445   : > { %v1348_v37 = vpop.f32.mrb[6].mxu1 }
0x1446   : > { %v1349_v38 = vadd.f32 %v2332_v11, %v1348_v37  ;;  %v1752_v39 = vpop.f32.mrb[7].mxu1 }
0x1448   : > { %1360 = vrot.lane.b32.xlu1 %v1349_v38, %s2074_s30  ;;  %v1352_v41 = vadd.f32 %v1349_v38, %v1276_v40  ;;  %s496_s30 = scalar_lea.vmem %s2508_s14, %s1633_s11 [#allocation7]  ;;  %s2673_s11 = sshll.u32 %s2468_s12, 1 }
0x1449   : > { %s1271_s17 = scalar_lea.vmem %s2508_s14, %s2673_s11 [#allocation7]  ;;  %s1013_s12 = scalar_lea.vmem %s2508_s14, %s2675_s16 [#allocation7] }
0x144a   : > { %v1664_v0 = vmul.f32 -1.442695, %v1352_v41  ;;  %s1400_s11 = scalar_lea.vmem %s2508_s14, %s1662_s18 [#allocation7]  ;;  %s2564_s18 = scalar_lea.hbm %s2641_s6, %s1668_s13 }
0x144c   : > { %1384 = vperm.xlu1 %1848, %v1665_v6   ;;  %1892 = vpow2.f32 %v1664_v0 }
0x1456   : > { %v1893_v42 = vpop.eup %1892 }
0x1457   : > { %v1356_v43 = vadd.f32 1.0, %v1893_v42 }
0x1459   : > { %1894 = vrcp.f32 %v1356_v43 }
0x1463   : > { %v1895_v44 = vpop.eup %1894 }
0x1464   : > { %v1370_v49 = vsub.f32 1.0, %v1895_v44  ;;  %v1376_v51 = vmul.f32 %v1895_v44, %v1266_v32 }
0x14ba   : > { %v1361_v11 = vpop.permute.xlu1 %1360 }
0x14bb   : > { %v1363_v45 = vmul.f32 %v1895_v44, %v1361_v11 }
0x14bd   : > { %1365 = vrot.lane.b32.xlu0 %v1363_v45, %s2651_s15  ;;  %s755_s15 = scalar_lea.vmem %s2508_s14, %s2671_s28 [#allocation7]  ;;  %s2676_s28 = sshll.u32 %s2448_s8, 1 }
0x14be   : > { %s1142_s7 = scalar_lea.vmem %s2508_s14, %s2676_s28 [#allocation7] }
0x14c1   : > { %1391 = vperm.xlu0 %1849, %v1388_v7  }
0x14c5   : > { %493 = vrot.lane.b32.xlu0 %v2343_v36, %s2076_s29 }
0x14c9   : > { %752 = vrot.lane.b32.xlu0 %v2391_v33, %s2076_s29 }
0x14cb   : > { %v1385_v33 = vpop.permute.xlu1 %1384 }
0x14cd   : > { %1010 = vrot.lane.b32.xlu0 %v2438_v31, %s2076_s29 }
0x14d1   : > { %1268 = vrot.lane.b32.xlu0 %v1258_v30, %s2076_s29 }
0x152f   : > { %v1366_v1 = vpop.permute.xlu0 %1365 }
0x1530   : > { %v1368_v46 = vadd.f32 %v1366_v1, %v1276_v40 }
0x1532   : > { %1896 = vtanh.f32 %v1368_v46 }
0x153c   : > { %v1897_v47 = vpop.eup %1896 }
0x153d   : > { %1372 = vrot.lane.b32.xlu1 %v1897_v47, %s2076_s29 }
0x1540   : > { %v1392_v48 = vpop.permute.xlu0 %1391 }
0x1541   : > { %623 = vrot.lane.b32.xlu1 %v2367_v2, %s2076_s29  ;;  %v1394_v54 = vmul.f32 %v1392_v48, %v1266_v32 }
0x1544   : > { %v494_v36 = vpop.permute.xlu0 %493 }
0x1545   : > { %498 = vst.msk [vmem:[%s496_s30] sm:$0x3] %vm497_vm10, %v494_v36  ;;  %881 = vrot.lane.b32.xlu1 %v2415_v61, %s2076_s29 }
0x1548   : > { %v753_v2 = vpop.permute.xlu0 %752 }
0x1549   : > { %756 = vst.msk [vmem:[%s755_s15] sm:$0x3] %vm497_vm10, %v753_v2  ;;  %1139 = vrot.lane.b32.xlu1 %v2461_v59, %s2076_s29  ;;  %s2674_s15 = sshll.u32 %s2402_s20, 1  ;;  %s1631_s20 = sshll.u32 %s2271_s26, 1 }
0x154a   : > { %s884_s30 = scalar_lea.vmem %s2508_s14, %s2674_s15 [#allocation7] }
0x154c   : > { %v1011_v31 = vpop.permute.xlu0 %1010 }
0x1550   : > { %v1269_v55 = vpop.permute.xlu0 %1268 }
0x15af   : > { %v1373_v50 = vpop.permute.xlu1 %1372 }
0x15b0   : > { %v1375_v52 = vmul.f32 %v1373_v50, %v1370_v49 }
0x15b2   : > { %v1377_v61 = vadd.f32 %v1376_v51, %v1375_v52 }
0x15b3   : > { %v624_v53 = vpop.permute.xlu1 %623 }
0x15b4   : > { %627 = vst.msk [vmem:[%s626_s19] sm:$0x3] %vm497_vm10, %v624_v53  ;;  %v1387_v56 = vmul.f32 %v1385_v33, %v1377_v61  ;;  %s1425_s19 = sshll.u32 %s2508_s14, 4  ;;  %s1408_s14 = scalar_lea.sflag [#allocation4], %s2271_s26  ;;  %s2555_s19 = int_to_ptr.vmem [resolvable:$true] %s1425_s19 }
0x15b5   : > { %1272 = vst.msk [vmem:[%s1271_s17] sm:$0x3] %vm497_vm10, %v1269_v55  ;;  %s1958_s16 = scalar_lea.vmem %s2555_s19, 256 }
0x15b6   : > { %1397 = vrot.lane.b32.xlu1 %v1387_v56, %s2076_s29  ;;  %v1395_v57 = vadd.f32 %v1394_v54, %v1387_v56  ;;  %p1959_p7 = scmp.ne.s32.totalorder %s2555_s19, %s1958_s16 }
0x15b7   : > { %v882_v58 = vpop.permute.xlu1 %881 }
0x15b8   : > { %885 = vst.msk [vmem:[%s884_s30] sm:$0x3] %vm497_vm10, %v882_v58  ;;  %1403 = vrot.lane.b32.xlu0 %v1395_v57, %s2076_s29  ;;  %s2553_s30 = scalar_lea.hbm %s2640_s5, %s1668_s13  ;;  %s2557_s29 = scalar_lea.vmem [#allocation8], %s1631_s20 }
0x15b9   : > { %1014 = vst.msk [vmem:[%s1013_s12] sm:$0x3] %vm497_vm10, %v1011_v31  ;;  %s1441_s8 = sshll.u32 %s2557_s29, 4  ;;  %p1960_p3 = pnand %p1959_p7, %p2677_p1  ;;  %s2566_s8 = int_to_ptr.vmem [resolvable:$true] %s1441_s8 }
0x15ba   : > { %s2077_s12 = smov [#allocation7]  }
0x15bb   : > { %v1140_v59 = vpop.permute.xlu1 %1139  ;;  %p1961_p5 = pneg %p1960_p3  ;;  %s1962_s28 = sshll.u32 %s2077_s12, 4  ;;  %s1963_s28 = int_to_ptr.vmem [resolvable:$false] %s1962_s28 }
0x15bc   : > { %1143 = vst.msk [vmem:[%s1142_s7] sm:$0x3] %vm497_vm10, %v1140_v59  ;;  %s1964_s7 = scalar_lea.vmem %s1963_s28, 512  ;;  %p1965_p6 = scmp.lt.s32.totalorder %s2555_s19, %s1963_s28 }
0x15bd   : > { %p1966_p13 = scmp.lt.s32.totalorder %s1964_s7, %s1958_s16 }
0x15bf   : > { %p1967_p2 = por %p1966_p13, %p1965_p6 }
0x15c1   : > { %p1968_p12 = pnand %p1967_p2, %p1961_p5 }
0x1628   : > { %v1398_v60 = vpop.permute.xlu1 %1397 }
0x1629   : > { %1401 = vst.msk [vmem:[%s1400_s11] sm:$0x3] %vm497_vm10, %v1398_v60 }
0x162a   : > { %v1404_v62 = vpop.permute.xlu0 %1403 }
0x162b   : > { %1971 = shalt.err (!%p1968_p12)
}
0x162c   : > { %s1972_s20 = scalar_lea.hbm %s2553_s30, 256  ;;  %s1976_s17 = scalar_lea.hbm %s2640_s5, 512 }
0x162d   : > { %p1973_p10 = scmp.ne.s32.totalorder %s2553_s30, %s1972_s20  ;;  %p1977_p4 = scmp.lt.u32.totalorder %s2553_s30, %s2640_s5 }
0x162e   : > { %p1978_p11 = scmp.lt.u32.totalorder %s1976_s17, %s1972_s20  ;;  %p1980_p7 = scmp.lt.u32.totalorder %s1972_s20, %s2553_s30 }
0x162f   : > { %p1974_p8 = pnand %p1973_p10, %p2677_p1 }
0x1630   : > { %p1979_p0 = por %p1978_p11, %p1977_p4 }
0x1631   : > { %p1975_p9 = pneg %p1974_p8 }
0x1632   : > { %p1981_p3 = por %p1980_p7, %p1979_p0 }
0x1634   : > { %p1982_p5 = pnand %p1981_p3, %p1975_p9 }
0x1636   : > { %1985 = shalt.err (!%p1982_p5)
}
0x1637   : > { %s2078_s0 = smov 64   ;;  %s2079_s16 = smov 2   ;;  %1406 = vst.msk [vmem:[%s2557_s29] sm:$0x3] %vm497_vm10, %v1404_v62 }
0x1638   : > { %s2678_s12 = smov 32   ;;  %s1413_s28 = scalar_lea.sflag [#allocation9], %s2271_s26 }
0x1639   : > { %1781 = dma.vmem_to_hbm [thread:$0]  (%p2677_p1), %s2555_s19, 256, %s2553_s30, %s1408_s14, %s2678_s12, %s2078_s0, %s2079_s16  }
0x163a   : > { %s1986_s7 = scalar_lea.vmem %s2566_s8, 32  ;;  %s2080_s20 = smov [#allocation8]  }
0x163b   : > { %p1987_p6 = scmp.ne.s32.totalorder %s2566_s8, %s1986_s7  ;;  %s1990_s13 = sshll.u32 %s2080_s20, 4  ;;  %s1991_s13 = int_to_ptr.vmem [resolvable:$false] %s1990_s13 }
0x163c   : > { %s1992_s11 = scalar_lea.vmem %s1991_s13, 64  ;;  %p1993_p12 = scmp.lt.s32.totalorder %s2566_s8, %s1991_s13 }
0x163d   : > { %p1988_p13 = pnand %p1987_p6, %p2677_p1  ;;  %p1994_p10 = scmp.lt.s32.totalorder %s1992_s11, %s1986_s7 }
0x163f   : > { %p1989_p2 = pneg %p1988_p13  ;;  %p1995_p8 = por %p1994_p10, %p1993_p12 }
0x1641   : > { %p1996_p9 = pnand %p1995_p8, %p1989_p2 }
0x1643   : > { %1999 = shalt.err (!%p1996_p9)
}
0x1644   : > { %s2000_s26 = scalar_lea.hbm %s2564_s18, 32  ;;  %s2004_s29 = scalar_lea.hbm %s2641_s6, 64 }
0x1645   : > { %p2001_p4 = scmp.ne.s32.totalorder %s2564_s18, %s2000_s26  ;;  %p2005_p7 = scmp.lt.u32.totalorder %s2564_s18, %s2641_s6 }
0x1646   : > { %p2006_p3 = scmp.lt.u32.totalorder %s2004_s29, %s2000_s26  ;;  %p2008_p6 = scmp.lt.u32.totalorder %s2000_s26, %s2564_s18 }
0x1647   : > { %p2002_p11 = pnand %p2001_p4, %p2677_p1 }
0x1648   : > { %p2007_p5 = por %p2006_p3, %p2005_p7 }
0x1649   : > { %p2003_p0 = pneg %p2002_p11 }
0x164a   : > { %p2009_p13 = por %p2008_p6, %p2007_p5 }
0x164c   : > { %p2010_p2 = pnand %p2009_p13, %p2003_p0 }
0x164e   : > { %2013 = shalt.err (!%p2010_p2)
}
0x164f   : > { %1782 = dma.vmem_to_hbm [thread:$0]  (%p2677_p1), %s2566_s8, 32, %s2564_s18, %s1413_s28  }
0x1650 PF: > { %s1453_s15 = sand.u32 1, %s2048_s21   ;;  %p2679_p12 = scmp.ne.s32.totalorder %s2657_s10, 0 }
0x1651   : > { %p2680_p10 = scmp.ge.s32.totalorder %s2060_s24, 2  ;;  %s1454_s25 = scalar_lea.sflag [#allocation4], %s1453_s15 }
0x1653   : > { %p1793_p8 = pnand %p2680_p10, %p2679_p12 }
0x1655   : > { %2039 = dma.done.wait (!%p1793_p8), %s1454_s25, 256  }
0x1656   : > { %2041 = vsyncadd (!%p1793_p8), %s1454_s25, 4294967040  ;;  %s1463_s0 = scalar_lea.sflag [#allocation9], %s1453_s15 }
0x1657   : > { %2043 = dma.done.wait (!%p1793_p8), %s1463_s0, 32  }
0x1658   : > { %2045 = vsyncadd (!%p1793_p8), %s1463_s0, 4294967264  ;;  %s2681_s9 = sld [smem:[#allocation14_spill]]  ;;  %p26_p1 = scmp.ge.s32.totalorder %s2141_s27, 4  }
0x1659   : > { %s2682_s21 = smov %s2052_s22  ;;  %s2683_s22 = smov %s2056_s23 }
0x165a   : > { %s2685_s24 = smov %s2141_s27  ;;  %28 = sbr.rel (!%p26_p1) target bundleno = 11 (0xb), region = 137 }
0x165e   : > { %s2684_s23 = smov %s2681_s9 }
0x1661   :  { %1468 = vsyncpa [#allocation3], 1 }
0x1662   :  { %1470 = vsyncpa [#allocation3 + $0x1], 1 }
0x1663   :  { %1471 = vsyncpa [#allocation6], 1 }
0x1664   :  { %1473 = vsyncpa [#allocation6 + $0x1], 1 }
0x1665   :  { %1474 = vsyncpa [#allocation4], 1 }
0x1666   :  { %1476 = vsyncpa [#allocation4 + $0x1], 1 }
0x1667   :  { %1477 = vsyncpa [#allocation9], 1 }
0x1668   :  { %1479 = vsyncpa [#allocation9 + $0x1], 1 }

</bundles_post_ra>
